<compile_context>
chip_gen: v6e
topology: v6e:2x2x1
jax: 0.10.0
libtpu: 0.0.40
codegen_flags: <defaults>
</compile_context>

<pallas_src>
import functools
from math import sqrt

import jax
import jax.numpy as jnp
from jax import lax
from jax.experimental import pallas as pl
from jax.experimental.pallas import tpu as pltpu


def _layer_norm(x, gamma, beta, eps=1e-5):
    """LayerNorm over the last axis, f32 math (PyTorch default eps=1e-5)."""
    mu = jnp.mean(x, axis=-1, keepdims=True)
    xc = x - mu
    var = jnp.mean(xc * xc, axis=-1, keepdims=True)
    return xc * lax.rsqrt(var + eps) * gamma + beta


def _mh_attention(q, kv, n_heads, out_scratch):
    """Multi-head scaled-dot-product attention with NO projections.

    q  : (L, D) f32 queries
    kv : (S, D) f32 keys == values (matches the reference call pattern)
    out_scratch : (L, D) f32 VMEM scratch the per-head outputs are written into
    """
    L, D = q.shape
    S = kv.shape[0]
    H = n_heads
    Dh = D // H
    scale = 1.0 / sqrt(Dh)

    # (H, T, Dh) head layout built from static lane slices (no reshape of the
    # tiled minor dims); bf16 at the MXU inputs, f32 accumulation.
    qh = jnp.stack([q[:, h * Dh:(h + 1) * Dh] for h in range(H)],
                   axis=0).astype(jnp.bfloat16)            # (H, L, Dh)
    kh = jnp.stack([kv[:, h * Dh:(h + 1) * Dh] for h in range(H)],
                   axis=0).astype(jnp.bfloat16)            # (H, S, Dh)

    # One head-batched MXU contraction for Q.K^T ...
    s = jnp.einsum('hle,hse->hls', qh, kh,
                   preferred_element_type=jnp.float32) * scale   # (H, L, S) f32
    # ... softmax over S in f32 (no mask: reference never applies one) ...
    # TODO(synk): for long sequences this holds the full (L, S) scores per head;
    # switch to flash-style online-softmax tiling over S with heads on a grid axis.
    m = jnp.max(s, axis=-1, keepdims=True)
    e = jnp.exp(s - m)
    a = e * pl.reciprocal(jnp.sum(e, axis=-1, keepdims=True), approx=True)

    # ... and one head-batched MXU contraction for A.V (f32 accumulate).
    o = jnp.einsum('hls,hsd->hld', a.astype(jnp.bfloat16), kh,
                   preferred_element_type=jnp.float32)           # (H, L, Dh)

    # Write each head's slice straight into the (L, D) scratch — no concatenate.
    for h in range(H):
        out_scratch[:, h * Dh:(h + 1) * Dh] = o[h]
    return out_scratch[...]


def decoder_layer_kernel(x_ref, cross_ref,
                         w1t_ref, b1_ref, w2t_ref, b2_ref,
                         g1_ref, bt1_ref, g2_ref, bt2_ref, g3_ref, bt3_ref,
                         out_ref, attn_scratch, *, n_heads):
    """One DecoderLayer step of the fused decoder; grid = (batch, layer).

    The output block index depends only on the batch axis, so out_ref stays
    resident in VMEM across the (arbitrary) layer axis and acts as the running
    activation buffer — activations never round-trip HBM between layers.
    """
    layer = pl.program_id(1)

    @pl.when(layer == 0)
    def _():
        out_ref[...] = x_ref[...]

    x = out_ref[0]          # (L, D) running activations, f32
    cross = cross_ref[0]    # (S, D)

    # --- self-attention: q = k = v = x; residual + norm_1 (dropout = identity)
    sa = _mh_attention(x, x, n_heads, attn_scratch)
    x = _layer_norm(x + sa, g1_ref[0], bt1_ref[0])

    # --- cross-attention: q = x, k = v = cross; residual + norm_2
    ca = _mh_attention(x, cross, n_heads, attn_scratch)
    x = _layer_norm(x + ca, g2_ref[0], bt2_ref[0])

    # --- pointwise FFN (Conv1d k=1 == linear), ReLU; bf16 MXU inputs, f32 acc.
    h = jnp.dot(x.astype(jnp.bfloat16), w1t_ref[0],
                preferred_element_type=jnp.float32) + b1_ref[0]
    h = jnp.maximum(h, 0.0)
    y = jnp.dot(h.astype(jnp.bfloat16), w2t_ref[0],
                preferred_element_type=jnp.float32) + b2_ref[0]

    # --- residual + norm_3
    out_ref[0] = _layer_norm(x + y, g3_ref[0], bt3_ref[0])


def decoder_forward(x, cross, params, n_heads):
    """Decoder.forward: all layers fused into one pallas_call.

    norm_layer is None in the reference default, so there is no final norm.
    """
    B, L, D = x.shape
    Bc, S, Dc = cross.shape
    assert Bc == B and Dc == D and D % n_heads == 0
    w1t, b1, w2t, b2, g1, bt1, g2, bt2, g3, bt3 = params
    n_layers, _, d_ff = w1t.shape

    kernel = functools.partial(decoder_layer_kernel, n_heads=n_heads)

    def layer_spec(block_shape):
        # stacked-over-layers parameters: block index follows the layer axis
        return pl.BlockSpec(block_shape, lambda b, l: (l, 0, 0))

    out = pl.pallas_call(
        kernel,
        out_shape=jax.ShapeDtypeStruct((B, L, D), jnp.float32),
        grid_spec=pltpu.PrefetchScalarGridSpec(
            num_scalar_prefetch=0,
            grid=(B, n_layers),          # layer axis innermost ("arbitrary")
            in_specs=[
                pl.BlockSpec((1, L, D), lambda b, l: (b, 0, 0)),   # x
                pl.BlockSpec((1, S, D), lambda b, l: (b, 0, 0)),   # cross
                layer_spec((1, D, d_ff)),   # w1t (bf16)
                layer_spec((1, 1, d_ff)),   # b1
                layer_spec((1, d_ff, D)),   # w2t (bf16)
                layer_spec((1, 1, D)),      # b2
                layer_spec((1, 1, D)),      # gamma1
                layer_spec((1, 1, D)),      # beta1
                layer_spec((1, 1, D)),      # gamma2
                layer_spec((1, 1, D)),      # beta2
                layer_spec((1, 1, D)),      # gamma3
                layer_spec((1, 1, D)),      # beta3
            ],
            out_specs=pl.BlockSpec((1, L, D), lambda b, l: (b, 0, 0)),
            scratch_shapes=[pltpu.VMEM((L, D), jnp.float32)],
        ),
        compiler_params=pltpu.CompilerParams(
            dimension_semantics=("parallel", "arbitrary"),
            vmem_limit_bytes=32 * 1024 * 1024,
        ),
    )(x, cross, w1t, b1, w2t, b2, g1, bt1, g2, bt2, g3, bt3)
    return out


def init_decoder_params(key, d_layers, d_model, d_ff):
    """Deterministic parameter init, stacked over layers.

    Conv1d weights ~ small normal (bf16 for the MXU), biases/LN params in f32.
    """
    w1t, b1, w2t, b2 = [], [], [], []
    for _ in range(d_layers):
        key, k1, k2, k3, k4 = jax.random.split(key, 5)
        w1 = 0.05 * jax.random.normal(k1, (d_ff, d_model), jnp.float32)   # conv_1 (out,in)
        b1_ = 0.05 * jax.random.normal(k2, (d_ff,), jnp.float32)
        w2 = 0.05 * jax.random.normal(k3, (d_model, d_ff), jnp.float32)   # conv_2 (out,in)
        b2_ = 0.05 * jax.random.normal(k4, (d_model,), jnp.float32)
        w1t.append(w1.T)       # (D, d_ff)
        b1.append(b1_)
        w2t.append(w2.T)       # (d_ff, D)
        b2.append(b2_)

    w1t = jnp.stack(w1t).astype(jnp.bfloat16)            # (NL, D, d_ff)
    b1 = jnp.stack(b1)[:, None, :]                       # (NL, 1, d_ff)
    w2t = jnp.stack(w2t).astype(jnp.bfloat16)            # (NL, d_ff, D)
    b2 = jnp.stack(b2)[:, None, :]                       # (NL, 1, D)
    ones = jnp.ones((d_layers, 1, d_model), jnp.float32)
    zeros = jnp.zeros((d_layers, 1, d_model), jnp.float32)
    # norm_1 / norm_2 / norm_3 scale & bias
    return (w1t, b1, w2t, b2, ones, zeros, ones, zeros, ones, zeros)


if __name__ == "__main__":
    B, L, S, d_model, n_heads, d_ff, d_layers = 2, 8, 16, 32, 4, 64, 2

    key = jax.random.PRNGKey(0)
    kx, kc, kp = jax.random.split(key, 3)
    x = jax.random.normal(kx, (B, L, d_model), jnp.float32)
    cross = jax.random.normal(kc, (B, S, d_model), jnp.float32)
    params = init_decoder_params(kp, d_layers, d_model, d_ff)

    out = decoder_forward(x, cross, params, n_heads)
    out = jax.block_until_ready(out)

    assert out.shape == (B, L, d_model)
    assert bool(jnp.all(jnp.isfinite(out)))
    print("KERNEL_OK")
</pallas_src>

<mosaic_0001>
module attributes {stable_mosaic.version = 11 : i64} {
  func.func @decoder_layer_kernel(%arg0: i32, %arg1: i32, %arg2: memref<1x8x32xf32, #tpu.memory_space<vmem>>, %arg3: memref<1x16x32xf32, #tpu.memory_space<vmem>>, %arg4: memref<1x32x64xbf16, #tpu.memory_space<vmem>>, %arg5: memref<1x1x64xf32, #tpu.memory_space<vmem>>, %arg6: memref<1x64x32xbf16, #tpu.memory_space<vmem>>, %arg7: memref<1x1x32xf32, #tpu.memory_space<vmem>>, %arg8: memref<1x1x32xf32, #tpu.memory_space<vmem>>, %arg9: memref<1x1x32xf32, #tpu.memory_space<vmem>>, %arg10: memref<1x1x32xf32, #tpu.memory_space<vmem>>, %arg11: memref<1x1x32xf32, #tpu.memory_space<vmem>>, %arg12: memref<1x1x32xf32, #tpu.memory_space<vmem>>, %arg13: memref<1x1x32xf32, #tpu.memory_space<vmem>>, %arg14: memref<1x8x32xf32, #tpu.memory_space<vmem>>, %arg15: memref<8x32xf32, #tpu.memory_space<vmem>>) attributes {dimension_semantics = [#tpu.dimension_semantics<parallel>, #tpu.dimension_semantics<arbitrary>], iteration_bounds = array<i64: 2, 2>, scalar_prefetch = 0 : i64, scratch_operands = 1 : i64, tpu.core_type = #tpu.core_type<tc>, window_params = [{transform_indices = @transform_0, window_bounds = array<i64: 1, 8, 32>}, {transform_indices = @transform_1, window_bounds = array<i64: 1, 16, 32>}, {transform_indices = @transform_2, window_bounds = array<i64: 1, 32, 64>}, {transform_indices = @transform_3, window_bounds = array<i64: 1, 1, 64>}, {transform_indices = @transform_4, window_bounds = array<i64: 1, 64, 32>}, {transform_indices = @transform_5, window_bounds = array<i64: 1, 1, 32>}, {transform_indices = @transform_6, window_bounds = array<i64: 1, 1, 32>}, {transform_indices = @transform_7, window_bounds = array<i64: 1, 1, 32>}, {transform_indices = @transform_8, window_bounds = array<i64: 1, 1, 32>}, {transform_indices = @transform_9, window_bounds = array<i64: 1, 1, 32>}, {transform_indices = @transform_10, window_bounds = array<i64: 1, 1, 32>}, {transform_indices = @transform_11, window_bounds = array<i64: 1, 1, 32>}, {transform_indices = @transform_12, window_bounds = array<i64: 1, 8, 32>}]} {
    %c0_i32 = arith.constant 0 : i32
    %0 = arith.cmpi eq, %arg1, %c0_i32 : i32
    %1 = arith.extui %0 : i1 to i32
    %c0_i32_0 = arith.constant 0 : i32
    %2 = arith.cmpi ne, %1, %c0_i32_0 : i32
    scf.if %2 {
      %c0_83 = arith.constant 0 : index
      %c0_84 = arith.constant 0 : index
      %c0_85 = arith.constant 0 : index
      %199 = vector.load %arg2[%c0_83, %c0_84, %c0_85] : memref<1x8x32xf32, #tpu.memory_space<vmem>>, vector<1x8x32xf32>
      %c0_86 = arith.constant 0 : index
      %c0_87 = arith.constant 0 : index
      %c0_88 = arith.constant 0 : index
      %200 = vector.load %arg14[%c0_86, %c0_87, %c0_88] : memref<1x8x32xf32, #tpu.memory_space<vmem>>, vector<1x8x32xf32>
      tpu.vector_store %arg14[%c0_86, %c0_87, %c0_88], %199 {strides = array<i32>} : memref<1x8x32xf32, #tpu.memory_space<vmem>>, vector<1x8x32xf32>,
    } else {
    }
    %c0 = arith.constant 0 : index
    %c0_1 = arith.constant 0 : index
    %c0_2 = arith.constant 0 : index
    %3 = vector.load %arg14[%c0, %c0_1, %c0_2] : memref<1x8x32xf32, #tpu.memory_space<vmem>>, vector<1x8x32xf32>
    %4 = vector.shape_cast %3 : vector<1x8x32xf32> to vector<8x32xf32>
    %c0_3 = arith.constant 0 : index
    %c0_4 = arith.constant 0 : index
    %c0_5 = arith.constant 0 : index
    %5 = vector.load %arg3[%c0_3, %c0_4, %c0_5] : memref<1x16x32xf32, #tpu.memory_space<vmem>>, vector<1x16x32xf32>
    %6 = vector.shape_cast %5 : vector<1x16x32xf32> to vector<16x32xf32>
    %7 = vector.extract_strided_slice %4 {offsets = [0, 0], sizes = [8, 8], strides = [1, 1]} : vector<8x32xf32> to vector<8x8xf32>
    %8 = vector.extract_strided_slice %4 {offsets = [0, 8], sizes = [8, 8], strides = [1, 1]} : vector<8x32xf32> to vector<8x8xf32>
    %9 = vector.extract_strided_slice %4 {offsets = [0, 16], sizes = [8, 8], strides = [1, 1]} : vector<8x32xf32> to vector<8x8xf32>
    %10 = vector.extract_strided_slice %4 {offsets = [0, 24], sizes = [8, 8], strides = [1, 1]} : vector<8x32xf32> to vector<8x8xf32>
    %11 = vector.shape_cast %7 : vector<8x8xf32> to vector<1x8x8xf32>
    %12 = vector.shape_cast %8 : vector<8x8xf32> to vector<1x8x8xf32>
    %13 = vector.shape_cast %9 : vector<8x8xf32> to vector<1x8x8xf32>
    %14 = vector.shape_cast %10 : vector<8x8xf32> to vector<1x8x8xf32>
    %15 = tpu.concatenate %11, %12, %13, %14 in 0 : vector<1x8x8xf32>, vector<1x8x8xf32>, vector<1x8x8xf32>, vector<1x8x8xf32> -> vector<4x8x8xf32>
    %16 = arith.truncf %15 : vector<4x8x8xf32> to vector<4x8x8xbf16>
    %17 = vector.extract_strided_slice %4 {offsets = [0, 0], sizes = [8, 8], strides = [1, 1]} : vector<8x32xf32> to vector<8x8xf32>
    %18 = vector.extract_strided_slice %4 {offsets = [0, 8], sizes = [8, 8], strides = [1, 1]} : vector<8x32xf32> to vector<8x8xf32>
    %19 = vector.extract_strided_slice %4 {offsets = [0, 16], sizes = [8, 8], strides = [1, 1]} : vector<8x32xf32> to vector<8x8xf32>
    %20 = vector.extract_strided_slice %4 {offsets = [0, 24], sizes = [8, 8], strides = [1, 1]} : vector<8x32xf32> to vector<8x8xf32>
    %21 = vector.shape_cast %17 : vector<8x8xf32> to vector<1x8x8xf32>
    %22 = vector.shape_cast %18 : vector<8x8xf32> to vector<1x8x8xf32>
    %23 = vector.shape_cast %19 : vector<8x8xf32> to vector<1x8x8xf32>
    %24 = vector.shape_cast %20 : vector<8x8xf32> to vector<1x8x8xf32>
    %25 = tpu.concatenate %21, %22, %23, %24 in 0 : vector<1x8x8xf32>, vector<1x8x8xf32>, vector<1x8x8xf32>, vector<1x8x8xf32> -> vector<4x8x8xf32>
    %26 = arith.truncf %25 : vector<4x8x8xf32> to vector<4x8x8xbf16>
    "tpu.trace_start"() <{level = 10 : i32, message = "hle,hse->hls"}> : () -> ()
    %cst = arith.constant dense<0.000000e+00> : vector<4x8x8xf32>
    %27 = tpu.matmul %16, %26, %cst {dimension_numbers = #tpu.dot_dimension_numbers<[2], [2], [1], [1], [0, 0, 0, 1, 1, 1], [0], [0]>} : vector<4x8x8xbf16>, vector<4x8x8xbf16>, vector<4x8x8xf32> -> vector<4x8x8xf32>
    "tpu.trace_stop"() : () -> ()
    %cst_6 = arith.constant 0.353553385 : f32
    %28 = vector.broadcast %cst_6 : f32 to vector<4x8x8xf32>
    %29 = arith.mulf %27, %28 : vector<4x8x8xf32>
    %cst_7 = arith.constant dense<0xFF800000> : vector<4x8xf32>
    %30 = vector.multi_reduction <maximumf>, %29, %cst_7 [2] : vector<4x8x8xf32> to vector<4x8xf32>
    %31 = vector.shape_cast %30 : vector<4x8xf32> to vector<4x8x1xf32>
    %32 = vector.broadcast %31 : vector<4x8x1xf32> to vector<4x8x8xf32>
    %33 = arith.subf %29, %32 : vector<4x8x8xf32>
    %34 = math.exp %33 : vector<4x8x8xf32>
    %cst_8 = arith.constant dense<0.000000e+00> : vector<4x8xf32>
    %35 = vector.multi_reduction <add>, %34, %cst_8 [2] : vector<4x8x8xf32> to vector<4x8xf32>
    %36 = vector.shape_cast %35 : vector<4x8xf32> to vector<4x8x1xf32>
    %37 = tpu.reciprocal %36 {approx = true} : vector<4x8x1xf32> -> vector<4x8x1xf32>
    %38 = vector.broadcast %37 : vector<4x8x1xf32> to vector<4x8x8xf32>
    %39 = arith.mulf %34, %38 : vector<4x8x8xf32>
    %40 = arith.truncf %39 : vector<4x8x8xf32> to vector<4x8x8xbf16>
    "tpu.trace_start"() <{level = 10 : i32, message = "hls,hsd->hld"}> : () -> ()
    %cst_9 = arith.constant dense<0.000000e+00> : vector<4x8x8xf32>
    %41 = tpu.matmul %40, %26, %cst_9 {dimension_numbers = #tpu.dot_dimension_numbers<[2], [1], [1], [2], [0, 0, 0, 1, 1, 2], [0], [0]>} : vector<4x8x8xbf16>, vector<4x8x8xbf16>, vector<4x8x8xf32> -> vector<4x8x8xf32>
    "tpu.trace_stop"() : () -> ()
    %42 = vector.extract_strided_slice %41 {offsets = [0, 0, 0], sizes = [1, 8, 8], strides = [1, 1, 1]} : vector<4x8x8xf32> to vector<1x8x8xf32>
    %43 = vector.shape_cast %42 : vector<1x8x8xf32> to vector<8x8xf32>
    %c0_10 = arith.constant 0 : index
    %c0_11 = arith.constant 0 : index
    %44 = vector.load %arg15[%c0_10, %c0_11] : memref<8x32xf32, #tpu.memory_space<vmem>>, vector<8x8xf32>
    tpu.vector_store %arg15[%c0_10, %c0_11], %43 {strides = array<i32>} : memref<8x32xf32, #tpu.memory_space<vmem>>, vector<8x8xf32>,
    %45 = vector.extract_strided_slice %41 {offsets = [1, 0, 0], sizes = [1, 8, 8], strides = [1, 1, 1]} : vector<4x8x8xf32> to vector<1x8x8xf32>
    %46 = vector.shape_cast %45 : vector<1x8x8xf32> to vector<8x8xf32>
    %c0_12 = arith.constant 0 : index
    %c8 = arith.constant 8 : index
    %47 = vector.load %arg15[%c0_12, %c8] : memref<8x32xf32, #tpu.memory_space<vmem>>, vector<8x8xf32>
    tpu.vector_store %arg15[%c0_12, %c8], %46 {strides = array<i32>} : memref<8x32xf32, #tpu.memory_space<vmem>>, vector<8x8xf32>,
    %48 = vector.extract_strided_slice %41 {offsets = [2, 0, 0], sizes = [1, 8, 8], strides = [1, 1, 1]} : vector<4x8x8xf32> to vector<1x8x8xf32>
    %49 = vector.shape_cast %48 : vector<1x8x8xf32> to vector<8x8xf32>
    %c0_13 = arith.constant 0 : index
    %c16 = arith.constant 16 : index
    %50 = vector.load %arg15[%c0_13, %c16] : memref<8x32xf32, #tpu.memory_space<vmem>>, vector<8x8xf32>
    tpu.vector_store %arg15[%c0_13, %c16], %49 {strides = array<i32>} : memref<8x32xf32, #tpu.memory_space<vmem>>, vector<8x8xf32>,
    %51 = vector.extract_strided_slice %41 {offsets = [3, 0, 0], sizes = [1, 8, 8], strides = [1, 1, 1]} : vector<4x8x8xf32> to vector<1x8x8xf32>
    %52 = vector.shape_cast %51 : vector<1x8x8xf32> to vector<8x8xf32>
    %c0_14 = arith.constant 0 : index
    %c24 = arith.constant 24 : index
    %53 = vector.load %arg15[%c0_14, %c24] : memref<8x32xf32, #tpu.memory_space<vmem>>, vector<8x8xf32>
    tpu.vector_store %arg15[%c0_14, %c24], %52 {strides = array<i32>} : memref<8x32xf32, #tpu.memory_space<vmem>>, vector<8x8xf32>,
    %c0_15 = arith.constant 0 : index
    %c0_16 = arith.constant 0 : index
    %54 = vector.load %arg15[%c0_15, %c0_16] : memref<8x32xf32, #tpu.memory_space<vmem>>, vector<8x32xf32>
    %55 = arith.addf %4, %54 : vector<8x32xf32>
    %c0_17 = arith.constant 0 : index
    %c0_18 = arith.constant 0 : index
    %c0_19 = arith.constant 0 : index
    %56 = vector.load %arg8[%c0_17, %c0_18, %c0_19] : memref<1x1x32xf32, #tpu.memory_space<vmem>>, vector<1x1x32xf32>
    %57 = vector.shape_cast %56 : vector<1x1x32xf32> to vector<1x32xf32>
    %c0_20 = arith.constant 0 : index
    %c0_21 = arith.constant 0 : index
    %c0_22 = arith.constant 0 : index
    %58 = vector.load %arg9[%c0_20, %c0_21, %c0_22] : memref<1x1x32xf32, #tpu.memory_space<vmem>>, vector<1x1x32xf32>
    %59 = vector.shape_cast %58 : vector<1x1x32xf32> to vector<1x32xf32>
    %cst_23 = arith.constant dense<0.000000e+00> : vector<8xf32>
    %60 = vector.multi_reduction <add>, %55, %cst_23 [1] : vector<8x32xf32> to vector<8xf32>
    %61 = vector.shape_cast %60 : vector<8xf32> to vector<8x1xf32>
    %cst_24 = arith.constant 3.200000e+01 : f32
    %62 = vector.broadcast %cst_24 : f32 to vector<8x1xf32>
    %63 = arith.divf %61, %62 : vector<8x1xf32>
    %64 = vector.broadcast %63 : vector<8x1xf32> to vector<8x32xf32>
    %65 = arith.subf %55, %64 : vector<8x32xf32>
    %66 = arith.mulf %65, %65 : vector<8x32xf32>
    %cst_25 = arith.constant dense<0.000000e+00> : vector<8xf32>
    %67 = vector.multi_reduction <add>, %66, %cst_25 [1] : vector<8x32xf32> to vector<8xf32>
    %68 = vector.shape_cast %67 : vector<8xf32> to vector<8x1xf32>
    %cst_26 = arith.constant 3.200000e+01 : f32
    %69 = vector.broadcast %cst_26 : f32 to vector<8x1xf32>
    %70 = arith.divf %68, %69 : vector<8x1xf32>
    %cst_27 = arith.constant 9.99999974E-6 : f32
    %71 = vector.broadcast %cst_27 : f32 to vector<8x1xf32>
    %72 = arith.addf %70, %71 : vector<8x1xf32>
    %73 = math.rsqrt %72 : vector<8x1xf32>
    %74 = vector.broadcast %73 : vector<8x1xf32> to vector<8x32xf32>
    %75 = arith.mulf %65, %74 : vector<8x32xf32>
    %76 = vector.broadcast %57 : vector<1x32xf32> to vector<8x32xf32>
    %77 = arith.mulf %75, %76 : vector<8x32xf32>
    %78 = vector.broadcast %59 : vector<1x32xf32> to vector<8x32xf32>
    %79 = arith.addf %77, %78 : vector<8x32xf32>
    %80 = vector.extract_strided_slice %79 {offsets = [0, 0], sizes = [8, 8], strides = [1, 1]} : vector<8x32xf32> to vector<8x8xf32>
    %81 = vector.extract_strided_slice %79 {offsets = [0, 8], sizes = [8, 8], strides = [1, 1]} : vector<8x32xf32> to vector<8x8xf32>
    %82 = vector.extract_strided_slice %79 {offsets = [0, 16], sizes = [8, 8], strides = [1, 1]} : vector<8x32xf32> to vector<8x8xf32>
    %83 = vector.extract_strided_slice %79 {offsets = [0, 24], sizes = [8, 8], strides = [1, 1]} : vector<8x32xf32> to vector<8x8xf32>
    %84 = vector.shape_cast %80 : vector<8x8xf32> to vector<1x8x8xf32>
    %85 = vector.shape_cast %81 : vector<8x8xf32> to vector<1x8x8xf32>
    %86 = vector.shape_cast %82 : vector<8x8xf32> to vector<1x8x8xf32>
    %87 = vector.shape_cast %83 : vector<8x8xf32> to vector<1x8x8xf32>
    %88 = tpu.concatenate %84, %85, %86, %87 in 0 : vector<1x8x8xf32>, vector<1x8x8xf32>, vector<1x8x8xf32>, vector<1x8x8xf32> -> vector<4x8x8xf32>
    %89 = arith.truncf %88 : vector<4x8x8xf32> to vector<4x8x8xbf16>
    %90 = vector.extract_strided_slice %6 {offsets = [0, 0], sizes = [16, 8], strides = [1, 1]} : vector<16x32xf32> to vector<16x8xf32>
    %91 = vector.extract_strided_slice %6 {offsets = [0, 8], sizes = [16, 8], strides = [1, 1]} : vector<16x32xf32> to vector<16x8xf32>
    %92 = vector.extract_strided_slice %6 {offsets = [0, 16], sizes = [16, 8], strides = [1, 1]} : vector<16x32xf32> to vector<16x8xf32>
    %93 = vector.extract_strided_slice %6 {offsets = [0, 24], sizes = [16, 8], strides = [1, 1]} : vector<16x32xf32> to vector<16x8xf32>
    %94 = vector.shape_cast %90 : vector<16x8xf32> to vector<1x16x8xf32>
    %95 = vector.shape_cast %91 : vector<16x8xf32> to vector<1x16x8xf32>
    %96 = vector.shape_cast %92 : vector<16x8xf32> to vector<1x16x8xf32>
    %97 = vector.shape_cast %93 : vector<16x8xf32> to vector<1x16x8xf32>
    %98 = tpu.concatenate %94, %95, %96, %97 in 0 : vector<1x16x8xf32>, vector<1x16x8xf32>, vector<1x16x8xf32>, vector<1x16x8xf32> -> vector<4x16x8xf32>
    %99 = arith.truncf %98 : vector<4x16x8xf32> to vector<4x16x8xbf16>
    "tpu.trace_start"() <{level = 10 : i32, message = "hle,hse->hls"}> : () -> ()
    %cst_28 = arith.constant dense<0.000000e+00> : vector<4x8x16xf32>
    %100 = tpu.matmul %89, %99, %cst_28 {dimension_numbers = #tpu.dot_dimension_numbers<[2], [2], [1], [1], [0, 0, 0, 1, 1, 1], [0], [0]>} : vector<4x8x8xbf16>, vector<4x16x8xbf16>, vector<4x8x16xf32> -> vector<4x8x16xf32>
    "tpu.trace_stop"() : () -> ()
    %cst_29 = arith.constant 0.353553385 : f32
    %101 = vector.broadcast %cst_29 : f32 to vector<4x8x16xf32>
    %102 = arith.mulf %100, %101 : vector<4x8x16xf32>
    %cst_30 = arith.constant dense<0xFF800000> : vector<4x8xf32>
    %103 = vector.multi_reduction <maximumf>, %102, %cst_30 [2] : vector<4x8x16xf32> to vector<4x8xf32>
    %104 = vector.shape_cast %103 : vector<4x8xf32> to vector<4x8x1xf32>
    %105 = vector.broadcast %104 : vector<4x8x1xf32> to vector<4x8x16xf32>
    %106 = arith.subf %102, %105 : vector<4x8x16xf32>
    %107 = math.exp %106 : vector<4x8x16xf32>
    %cst_31 = arith.constant dense<0.000000e+00> : vector<4x8xf32>
    %108 = vector.multi_reduction <add>, %107, %cst_31 [2] : vector<4x8x16xf32> to vector<4x8xf32>
    %109 = vector.shape_cast %108 : vector<4x8xf32> to vector<4x8x1xf32>
    %110 = tpu.reciprocal %109 {approx = true} : vector<4x8x1xf32> -> vector<4x8x1xf32>
    %111 = vector.broadcast %110 : vector<4x8x1xf32> to vector<4x8x16xf32>
    %112 = arith.mulf %107, %111 : vector<4x8x16xf32>
    %113 = arith.truncf %112 : vector<4x8x16xf32> to vector<4x8x16xbf16>
    "tpu.trace_start"() <{level = 10 : i32, message = "hls,hsd->hld"}> : () -> ()
    %cst_32 = arith.constant dense<0.000000e+00> : vector<4x8x8xf32>
    %114 = tpu.matmul %113, %99, %cst_32 {dimension_numbers = #tpu.dot_dimension_numbers<[2], [1], [1], [2], [0, 0, 0, 1, 1, 2], [0], [0]>} : vector<4x8x16xbf16>, vector<4x16x8xbf16>, vector<4x8x8xf32> -> vector<4x8x8xf32>
    "tpu.trace_stop"() : () -> ()
    %115 = vector.extract_strided_slice %114 {offsets = [0, 0, 0], sizes = [1, 8, 8], strides = [1, 1, 1]} : vector<4x8x8xf32> to vector<1x8x8xf32>
    %116 = vector.shape_cast %115 : vector<1x8x8xf32> to vector<8x8xf32>
    %c0_33 = arith.constant 0 : index
    %c0_34 = arith.constant 0 : index
    %117 = vector.load %arg15[%c0_33, %c0_34] : memref<8x32xf32, #tpu.memory_space<vmem>>, vector<8x8xf32>
    tpu.vector_store %arg15[%c0_33, %c0_34], %116 {strides = array<i32>} : memref<8x32xf32, #tpu.memory_space<vmem>>, vector<8x8xf32>,
    %118 = vector.extract_strided_slice %114 {offsets = [1, 0, 0], sizes = [1, 8, 8], strides = [1, 1, 1]} : vector<4x8x8xf32> to vector<1x8x8xf32>
    %119 = vector.shape_cast %118 : vector<1x8x8xf32> to vector<8x8xf32>
    %c0_35 = arith.constant 0 : index
    %c8_36 = arith.constant 8 : index
    %120 = vector.load %arg15[%c0_35, %c8_36] : memref<8x32xf32, #tpu.memory_space<vmem>>, vector<8x8xf32>
    tpu.vector_store %arg15[%c0_35, %c8_36], %119 {strides = array<i32>} : memref<8x32xf32, #tpu.memory_space<vmem>>, vector<8x8xf32>,
    %121 = vector.extract_strided_slice %114 {offsets = [2, 0, 0], sizes = [1, 8, 8], strides = [1, 1, 1]} : vector<4x8x8xf32> to vector<1x8x8xf32>
    %122 = vector.shape_cast %121 : vector<1x8x8xf32> to vector<8x8xf32>
    %c0_37 = arith.constant 0 : index
    %c16_38 = arith.constant 16 : index
    %123 = vector.load %arg15[%c0_37, %c16_38] : memref<8x32xf32, #tpu.memory_space<vmem>>, vector<8x8xf32>
    tpu.vector_store %arg15[%c0_37, %c16_38], %122 {strides = array<i32>} : memref<8x32xf32, #tpu.memory_space<vmem>>, vector<8x8xf32>,
    %124 = vector.extract_strided_slice %114 {offsets = [3, 0, 0], sizes = [1, 8, 8], strides = [1, 1, 1]} : vector<4x8x8xf32> to vector<1x8x8xf32>
    %125 = vector.shape_cast %124 : vector<1x8x8xf32> to vector<8x8xf32>
    %c0_39 = arith.constant 0 : index
    %c24_40 = arith.constant 24 : index
    %126 = vector.load %arg15[%c0_39, %c24_40] : memref<8x32xf32, #tpu.memory_space<vmem>>, vector<8x8xf32>
    tpu.vector_store %arg15[%c0_39, %c24_40], %125 {strides = array<i32>} : memref<8x32xf32, #tpu.memory_space<vmem>>, vector<8x8xf32>,
    %c0_41 = arith.constant 0 : index
    %c0_42 = arith.constant 0 : index
    %127 = vector.load %arg15[%c0_41, %c0_42] : memref<8x32xf32, #tpu.memory_space<vmem>>, vector<8x32xf32>
    %128 = arith.addf %79, %127 : vector<8x32xf32>
    %c0_43 = arith.constant 0 : index
    %c0_44 = arith.constant 0 : index
    %c0_45 = arith.constant 0 : index
    %129 = vector.load %arg10[%c0_43, %c0_44, %c0_45] : memref<1x1x32xf32, #tpu.memory_space<vmem>>, vector<1x1x32xf32>
    %130 = vector.shape_cast %129 : vector<1x1x32xf32> to vector<1x32xf32>
    %c0_46 = arith.constant 0 : index
    %c0_47 = arith.constant 0 : index
    %c0_48 = arith.constant 0 : index
    %131 = vector.load %arg11[%c0_46, %c0_47, %c0_48] : memref<1x1x32xf32, #tpu.memory_space<vmem>>, vector<1x1x32xf32>
    %132 = vector.shape_cast %131 : vector<1x1x32xf32> to vector<1x32xf32>
    %cst_49 = arith.constant dense<0.000000e+00> : vector<8xf32>
    %133 = vector.multi_reduction <add>, %128, %cst_49 [1] : vector<8x32xf32> to vector<8xf32>
    %134 = vector.shape_cast %133 : vector<8xf32> to vector<8x1xf32>
    %cst_50 = arith.constant 3.200000e+01 : f32
    %135 = vector.broadcast %cst_50 : f32 to vector<8x1xf32>
    %136 = arith.divf %134, %135 : vector<8x1xf32>
    %137 = vector.broadcast %136 : vector<8x1xf32> to vector<8x32xf32>
    %138 = arith.subf %128, %137 : vector<8x32xf32>
    %139 = arith.mulf %138, %138 : vector<8x32xf32>
    %cst_51 = arith.constant dense<0.000000e+00> : vector<8xf32>
    %140 = vector.multi_reduction <add>, %139, %cst_51 [1] : vector<8x32xf32> to vector<8xf32>
    %141 = vector.shape_cast %140 : vector<8xf32> to vector<8x1xf32>
    %cst_52 = arith.constant 3.200000e+01 : f32
    %142 = vector.broadcast %cst_52 : f32 to vector<8x1xf32>
    %143 = arith.divf %141, %142 : vector<8x1xf32>
    %cst_53 = arith.constant 9.99999974E-6 : f32
    %144 = vector.broadcast %cst_53 : f32 to vector<8x1xf32>
    %145 = arith.addf %143, %144 : vector<8x1xf32>
    %146 = math.rsqrt %145 : vector<8x1xf32>
    %147 = vector.broadcast %146 : vector<8x1xf32> to vector<8x32xf32>
    %148 = arith.mulf %138, %147 : vector<8x32xf32>
    %149 = vector.broadcast %130 : vector<1x32xf32> to vector<8x32xf32>
    %150 = arith.mulf %148, %149 : vector<8x32xf32>
    %151 = vector.broadcast %132 : vector<1x32xf32> to vector<8x32xf32>
    %152 = arith.addf %150, %151 : vector<8x32xf32>
    %153 = arith.truncf %152 : vector<8x32xf32> to vector<8x32xbf16>
    %c0_54 = arith.constant 0 : index
    %c0_55 = arith.constant 0 : index
    %c0_56 = arith.constant 0 : index
    %154 = vector.load %arg4[%c0_54, %c0_55, %c0_56] : memref<1x32x64xbf16, #tpu.memory_space<vmem>>, vector<1x32x64xbf16>
    %155 = vector.shape_cast %154 : vector<1x32x64xbf16> to vector<32x64xbf16>
    %cst_57 = arith.constant dense<0.000000e+00> : vector<8x64xf32>
    %156 = tpu.matmul %153, %155, %cst_57 {dimension_numbers = #tpu.dot_dimension_numbers<[1], [0], [0], [1], [0, 0, 1, 1], [], []>} : vector<8x32xbf16>, vector<32x64xbf16>, vector<8x64xf32> -> vector<8x64xf32>
    %c0_58 = arith.constant 0 : index
    %c0_59 = arith.constant 0 : index
    %c0_60 = arith.constant 0 : index
    %157 = vector.load %arg5[%c0_58, %c0_59, %c0_60] : memref<1x1x64xf32, #tpu.memory_space<vmem>>, vector<1x1x64xf32>
    %158 = vector.shape_cast %157 : vector<1x1x64xf32> to vector<1x64xf32>
    %159 = vector.broadcast %158 : vector<1x64xf32> to vector<8x64xf32>
    %160 = arith.addf %156, %159 : vector<8x64xf32>
    %cst_61 = arith.constant 0.000000e+00 : f32
    %161 = vector.broadcast %cst_61 : f32 to vector<8x64xf32>
    %162 = arith.maximumf %160, %161 : vector<8x64xf32>
    %163 = arith.truncf %162 : vector<8x64xf32> to vector<8x64xbf16>
    %c0_62 = arith.constant 0 : index
    %c0_63 = arith.constant 0 : index
    %c0_64 = arith.constant 0 : index
    %164 = vector.load %arg6[%c0_62, %c0_63, %c0_64] : memref<1x64x32xbf16, #tpu.memory_space<vmem>>, vector<1x64x32xbf16>
    %165 = vector.shape_cast %164 : vector<1x64x32xbf16> to vector<64x32xbf16>
    %cst_65 = arith.constant dense<0.000000e+00> : vector<8x32xf32>
    %166 = tpu.matmul %163, %165, %cst_65 {dimension_numbers = #tpu.dot_dimension_numbers<[1], [0], [0], [1], [0, 0, 1, 1], [], []>} : vector<8x64xbf16>, vector<64x32xbf16>, vector<8x32xf32> -> vector<8x32xf32>
    %c0_66 = arith.constant 0 : index
    %c0_67 = arith.constant 0 : index
    %c0_68 = arith.constant 0 : index
    %167 = vector.load %arg7[%c0_66, %c0_67, %c0_68] : memref<1x1x32xf32, #tpu.memory_space<vmem>>, vector<1x1x32xf32>
    %168 = vector.shape_cast %167 : vector<1x1x32xf32> to vector<1x32xf32>
    %169 = vector.broadcast %168 : vector<1x32xf32> to vector<8x32xf32>
    %170 = arith.addf %166, %169 : vector<8x32xf32>
    %171 = arith.addf %152, %170 : vector<8x32xf32>
    %c0_69 = arith.constant 0 : index
    %c0_70 = arith.constant 0 : index
    %c0_71 = arith.constant 0 : index
    %172 = vector.load %arg12[%c0_69, %c0_70, %c0_71] : memref<1x1x32xf32, #tpu.memory_space<vmem>>, vector<1x1x32xf32>
    %173 = vector.shape_cast %172 : vector<1x1x32xf32> to vector<1x32xf32>
    %c0_72 = arith.constant 0 : index
    %c0_73 = arith.constant 0 : index
    %c0_74 = arith.constant 0 : index
    %174 = vector.load %arg13[%c0_72, %c0_73, %c0_74] : memref<1x1x32xf32, #tpu.memory_space<vmem>>, vector<1x1x32xf32>
    %175 = vector.shape_cast %174 : vector<1x1x32xf32> to vector<1x32xf32>
    %cst_75 = arith.constant dense<0.000000e+00> : vector<8xf32>
    %176 = vector.multi_reduction <add>, %171, %cst_75 [1] : vector<8x32xf32> to vector<8xf32>
    %177 = vector.shape_cast %176 : vector<8xf32> to vector<8x1xf32>
    %cst_76 = arith.constant 3.200000e+01 : f32
    %178 = vector.broadcast %cst_76 : f32 to vector<8x1xf32>
    %179 = arith.divf %177, %178 : vector<8x1xf32>
    %180 = vector.broadcast %179 : vector<8x1xf32> to vector<8x32xf32>
    %181 = arith.subf %171, %180 : vector<8x32xf32>
    %182 = arith.mulf %181, %181 : vector<8x32xf32>
    %cst_77 = arith.constant dense<0.000000e+00> : vector<8xf32>
    %183 = vector.multi_reduction <add>, %182, %cst_77 [1] : vector<8x32xf32> to vector<8xf32>
    %184 = vector.shape_cast %183 : vector<8xf32> to vector<8x1xf32>
    %cst_78 = arith.constant 3.200000e+01 : f32
    %185 = vector.broadcast %cst_78 : f32 to vector<8x1xf32>
    %186 = arith.divf %184, %185 : vector<8x1xf32>
    %cst_79 = arith.constant 9.99999974E-6 : f32
    %187 = vector.broadcast %cst_79 : f32 to vector<8x1xf32>
    %188 = arith.addf %186, %187 : vector<8x1xf32>
    %189 = math.rsqrt %188 : vector<8x1xf32>
    %190 = vector.broadcast %189 : vector<8x1xf32> to vector<8x32xf32>
    %191 = arith.mulf %181, %190 : vector<8x32xf32>
    %192 = vector.broadcast %173 : vector<1x32xf32> to vector<8x32xf32>
    %193 = arith.mulf %191, %192 : vector<8x32xf32>
    %194 = vector.broadcast %175 : vector<1x32xf32> to vector<8x32xf32>
    %195 = arith.addf %193, %194 : vector<8x32xf32>
    %c0_80 = arith.constant 0 : index
    %c0_81 = arith.constant 0 : index
    %c0_82 = arith.constant 0 : index
    %196 = vector.load %arg14[%c0_80, %c0_81, %c0_82] : memref<1x8x32xf32, #tpu.memory_space<vmem>>, vector<1x8x32xf32>
    %197 = vector.shape_cast %196 : vector<1x8x32xf32> to vector<8x32xf32>
    %198 = vector.shape_cast %195 : vector<8x32xf32> to vector<1x8x32xf32>
    tpu.vector_store %arg14[%c0_80, %c0_81, %c0_82], %198 {strides = array<i32>} : memref<1x8x32xf32, #tpu.memory_space<vmem>>, vector<1x8x32xf32>,
    return
  }
  func.func @transform_0(%arg0: i32, %arg1: i32) -> (i32, i32, i32) {
    %c0_i32 = arith.constant 0 : i32
    %c0_i32_0 = arith.constant 0 : i32
    %c0_i32_1 = arith.constant 0 : i32
    return %arg0, %c0_i32, %c0_i32_0 : i32, i32, i32
  }
  func.func @transform_1(%arg0: i32, %arg1: i32) -> (i32, i32, i32) {
    %c0_i32 = arith.constant 0 : i32
    %c0_i32_0 = arith.constant 0 : i32
    %c0_i32_1 = arith.constant 0 : i32
    return %arg0, %c0_i32, %c0_i32_0 : i32, i32, i32
  }
  func.func @transform_2(%arg0: i32, %arg1: i32) -> (i32, i32, i32) {
    %c0_i32 = arith.constant 0 : i32
    %c0_i32_0 = arith.constant 0 : i32
    %c0_i32_1 = arith.constant 0 : i32
    return %arg1, %c0_i32, %c0_i32_0 : i32, i32, i32
  }
  func.func @transform_3(%arg0: i32, %arg1: i32) -> (i32, i32, i32) {
    %c0_i32 = arith.constant 0 : i32
    %c0_i32_0 = arith.constant 0 : i32
    %c0_i32_1 = arith.constant 0 : i32
    return %arg1, %c0_i32, %c0_i32_0 : i32, i32, i32
  }
  func.func @transform_4(%arg0: i32, %arg1: i32) -> (i32, i32, i32) {
    %c0_i32 = arith.constant 0 : i32
    %c0_i32_0 = arith.constant 0 : i32
    %c0_i32_1 = arith.constant 0 : i32
    return %arg1, %c0_i32, %c0_i32_0 : i32, i32, i32
  }
  func.func @transform_5(%arg0: i32, %arg1: i32) -> (i32, i32, i32) {
    %c0_i32 = arith.constant 0 : i32
    %c0_i32_0 = arith.constant 0 : i32
    %c0_i32_1 = arith.constant 0 : i32
    return %arg1, %c0_i32, %c0_i32_0 : i32, i32, i32
  }
  func.func @transform_6(%arg0: i32, %arg1: i32) -> (i32, i32, i32) {
    %c0_i32 = arith.constant 0 : i32
    %c0_i32_0 = arith.constant 0 : i32
    %c0_i32_1 = arith.constant 0 : i32
    return %arg1, %c0_i32, %c0_i32_0 : i32, i32, i32
  }
  func.func @transform_7(%arg0: i32, %arg1: i32) -> (i32, i32, i32) {
    %c0_i32 = arith.constant 0 : i32
    %c0_i32_0 = arith.constant 0 : i32
    %c0_i32_1 = arith.constant 0 : i32
    return %arg1, %c0_i32, %c0_i32_0 : i32, i32, i32
  }
  func.func @transform_8(%arg0: i32, %arg1: i32) -> (i32, i32, i32) {
    %c0_i32 = arith.constant 0 : i32
    %c0_i32_0 = arith.constant 0 : i32
    %c0_i32_1 = arith.constant 0 : i32
    return %arg1, %c0_i32, %c0_i32_0 : i32, i32, i32
  }
  func.func @transform_9(%arg0: i32, %arg1: i32) -> (i32, i32, i32) {
    %c0_i32 = arith.constant 0 : i32
    %c0_i32_0 = arith.constant 0 : i32
    %c0_i32_1 = arith.constant 0 : i32
    return %arg1, %c0_i32, %c0_i32_0 : i32, i32, i32
  }
  func.func @transform_10(%arg0: i32, %arg1: i32) -> (i32, i32, i32) {
    %c0_i32 = arith.constant 0 : i32
    %c0_i32_0 = arith.constant 0 : i32
    %c0_i32_1 = arith.constant 0 : i32
    return %arg1, %c0_i32, %c0_i32_0 : i32, i32, i32
  }
  func.func @transform_11(%arg0: i32, %arg1: i32) -> (i32, i32, i32) {
    %c0_i32 = arith.constant 0 : i32
    %c0_i32_0 = arith.constant 0 : i32
    %c0_i32_1 = arith.constant 0 : i32
    return %arg1, %c0_i32, %c0_i32_0 : i32, i32, i32
  }
  func.func @transform_12(%arg0: i32, %arg1: i32) -> (i32, i32, i32) {
    %c0_i32 = arith.constant 0 : i32
    %c0_i32_0 = arith.constant 0 : i32
    %c0_i32_1 = arith.constant 0 : i32
    return %arg0, %c0_i32, %c0_i32_0 : i32, i32, i32
  }
}

</mosaic_0001>

<bundles_post_ra>
// kernel: tpu_custom_call.1
= control target key start
LH: loop header
LB: loop body
LE: loop exit
PB: predicated region body
PF: predicated region fallthrough
CT: control target
= control target key end

     0   :  { %s2863_s0 = inlined_call_operand.vmem [shape: f32[2,8,32], index: 0, kind: input, shape index: {}]   ;;  %s2864_s1 = inlined_call_operand.vmem [shape: f32[2,16,32], index: 1, kind: input, shape index: {}]   ;;  %s2865_s2 = inlined_call_operand.vmem [shape: bf16[2,32,64], index: 2, kind: input, shape index: {}]   ;;  %s2866_s3 = inlined_call_operand.vmem [shape: f32[2,1,64], index: 3, kind: input, shape index: {}]   ;;  %s2867_s4 = inlined_call_operand.vmem [shape: bf16[2,64,32], index: 4, kind: input, shape index: {}]   ;;  %s2868_s5 = inlined_call_operand.vmem [shape: f32[2,1,32], index: 5, kind: input, shape index: {}]   ;;  %s2869_s6 = inlined_call_operand.vmem [shape: f32[2,1,32], index: 6, kind: input, shape index: {}]   ;;  %s2870_s7 = inlined_call_operand.vmem [shape: f32[2,1,32], index: 7, kind: input, shape index: {}]   ;;  %s2871_s8 = inlined_call_operand.vmem [shape: f32[2,1,32], index: 8, kind: input, shape index: {}]   ;;  %s2872_s9 = inlined_call_operand.vmem [shape: f32[2,1,32], index: 9, kind: input, shape index: {}]   ;;  %s2873_s10 = inlined_call_operand.vmem [shape: f32[2,1,32], index: 10, kind: input, shape index: {}]   ;;  %s2874_s11 = inlined_call_operand.vmem [shape: f32[2,1,32], index: 11, kind: input, shape index: {}]   ;;  %s2875_s12 = inlined_call_operand.hbm [shape: f32[2,8,32], index: 12, kind: output, shape index: {}]  }
   0x1   :  { %2891 = sst [smem:[#allocation19_spill]] %s2863_s0 }
   0x2   :  { %2892 = sst [smem:[#allocation20_spill]] %s2864_s1 }
   0x3   :  { %2893 = sst [smem:[#allocation21_spill]] %s2865_s2 }
   0x4   :  { %2894 = sst [smem:[#allocation22_spill]] %s2874_s11 }
   0x5   :  { %2895 = sst [smem:[#allocation23_spill]] %s2875_s12 }
   0x6   :  { %17 = vsyncpa [#allocation4], 0 }
   0x7   :  { %19 = vsyncpa [#allocation4 + $0x1], 0  ;;  %s2460_s21 = smov 0   ;;  %s2462_s22 = smov 0  }
   0x8   :  { %s2464_s23 = smov 0   ;;  %s2466_s24 = smov 0  }
   0x9   :  { %s2468_s25 = smov 0   ;;  %s2470_s26 = smov 0  }
   0xa   :  { %s2472_s27 = smov 0   ;;  %s2474_s28 = smov 0  }
   0xb LB: > { %2896 = sst [smem:[#allocation6_spill]] %s2356_s21  ;;  %s1945_s29 = sadd.s32 4294967295, %s2384_s28   ;;  %s2384_s28 = sphi %s2474_s28, %s25_s28   ;;  %s2380_s27 = sphi %s2472_s27, %s2934_s27   ;;  %s2376_s26 = sphi %s2470_s26, %s2933_s26   ;;  %s2372_s25 = sphi %s2468_s25, %s2932_s25   ;;  %s2368_s24 = sphi %s2466_s24, %s2931_s24   ;;  %s2364_s23 = sphi %s2464_s23, %s2930_s23   ;;  %s2360_s22 = sphi %s2462_s22, %s2929_s22   ;;  %s2356_s21 = sphi %s2460_s21, %s2928_s21  }
   0xc   : > { %2897 = sst [smem:[#allocation7_spill]] %s2360_s22  ;;  %s1946_s30 = sadd.s32 4294967294, %s2384_s28  }
   0xd   : > { %2898 = sst [smem:[#allocation8_spill]] %s2364_s23  ;;  %s34_s13 = sadd.s32 1, %s2376_s26 }
   0xe   : > { %2899 = sst [smem:[#allocation9_spill]] %s2368_s24  ;;  %p35_p0 = scmp.ge.s32.totalorder %s34_s13, 2 }
   0xf   : > { %2900 = sst [smem:[#allocation10_spill]] %s2372_s25  ;;  %s37_s14 = sadd.s32 1, %s2380_s27 }
  0x10   : > { %2901 = sst [smem:[#allocation11_spill]] %s2376_s26  ;;  %p366_p1 = scmp.ne.s32.totalorder %s2364_s23, %s2360_s22 }
  0x11   : > { %2902 = sst [smem:[#allocation12_spill]] %s2380_s27  ;;  %p367_p2 = scmp.eq.s32.totalorder %s1945_s29, 3 }
  0x12   : > { %2903 = sst [smem:[#allocation13_spill]] %s2384_s28  ;;  %s2936_s13 = smov (%p35_p0, %s34_s13), 0 }
  0x13   : > { %2904 = sst [smem:[#allocation14_spill]] %s2936_s13  ;;  %s2938_s14 = smov (!%p35_p0, %s37_s14), %s2380_s27 }
  0x14   : > { %p2509_p3 = por %p367_p2, %p366_p1  ;;  %p372_p4 = scmp.ne.s32.totalorder %s2360_s22, %s2356_s21 }
  0x15   : > { %p39_p5 = scmp.ge.s32.totalorder %s2938_s14, 2  ;;  %p373_p6 = scmp.eq.s32.totalorder %s1946_s30, 3 }
  0x16   : > { %s2905_s15 = scalar_select %p2509_p3, 1, 0 }
  0x17   : > { %p1949_p7 = scmp.ge.s32.totalorder %s2384_s28, 1  ;;  %p470_p8 = scmp.lt.s32.totalorder %s2384_s28, 5 }
  0x18   : > { %2906 = sst [smem:[#allocation15_spill]] %s2905_s15  ;;  %s2940_s14 = smov (%p39_p5, %s2938_s14), 0 }
  0x19   : > { %2907 = sst [smem:[#allocation16_spill]] %s2940_s14  ;;  %p2519_p9 = por %p373_p6, %p372_p4 }
  0x1a   : > { %p471_p10 = pnand %p1949_p7, %p470_p8  ;;  %s353_s17 = ssub.s32 %s2380_s27, %s2940_s14 }
  0x1b   : > { %s2908_s16 = scalar_select %p2519_p9, 1, 0 }
  0x1c   : > { %s356_s18 = sadd.s32 1, %s2364_s23  ;;  %p354_p11 = scmp.eq.s32.totalorder %s353_s17, 0 }
  0x1d   : > { %2909 = sst [smem:[#allocation17_spill]] %s2908_s16  ;;  %474 = sbr.rel (%p471_p10) target bundleno = 3312 (0xcf0), region = 68 }
  0x1e   : > { %s2527_s19 = scalar_select %p354_p11, %s2364_s23, %s356_s18  }
  0x1f   : > { %s2878_s20 = sand.u32 (!%p471_p10), 1, %s2360_s22   ;;  %p550_p12 = scmp.lt.s32.totalorder (!%p471_p10), %s2372_s25, 1 }
  0x20   : > { %2910 = sst [smem:[#allocation18_spill]] %s2527_s19  ;;  %s1950_s29 = sshll.u32 (!%p471_p10), %s2878_s20, 3 }
  0x21   : > { %p559_p13 = scmp.lt.s32.totalorder (!%p471_p10), %s2368_s24, 1  ;;  %s2911_s0 = sld [smem:[#allocation19_spill]] (!%p471_p10) }
  0x22   : > { %s551_s30 = scalar_select %p550_p12, %s2372_s25, 1 }
  0x23   : > { %s2536_s13 = scalar_select %p559_p13, %s2368_s24, 1 }
  0x24   : > { %s1951_s17 = sshll.u32 %s551_s30, 3  ;;  %s1995_s18 = sshll.u32 %s551_s30, 4 }
  0x25   : > { %s2912_s1 = sld [smem:[#allocation20_spill]]  ;;  %s1996_s16 = sshll.u32 %s2536_s13, 4 }
  0x26   : > { %s2913_s2 = sld [smem:[#allocation21_spill]]  ;;  %s1997_s30 = sshll.u32 %s2536_s13, 5 }
  0x27   : > { %s553_s20 = scalar_lea.vmem %s2911_s0, %s1951_s17  ;;  %s2560_s27 = scalar_lea.vmem %s2867_s4, %s1997_s30 }
  0x28   : > { %s580_s22 = scalar_lea.vmem %s2870_s7, %s2536_s13  ;;  %s583_s0 = scalar_lea.vmem %s2871_s8, %s2536_s13 }
  0x29   : > { %s586_s24 = scalar_lea.vmem %s2872_s9, %s2536_s13  ;;  %s589_s14 = scalar_lea.vmem %s2873_s10, %s2536_s13 }
  0x2a   : > { %s2914_s17 = sld [smem:[#allocation22_spill]]  ;;  %s2590_s21 = scalar_lea.vmem [#allocation3], %s1950_s29 }
  0x2b   : > { %s2544_s23 = scalar_lea.vmem %s2912_s1, %s1995_s18  ;;  %s2915_s12 = sld [smem:[#allocation9_spill]] }
  0x2c   : > { %s2554_s25 = scalar_lea.vmem %s2913_s2, %s1996_s16 }
  0x30   : > { %s592_s18 = scalar_lea.vmem %s2914_s17, %s2536_s13 }
  0x31   : > { %p1958_p0 = scmp.ne.s32.totalorder %s2915_s12, 0 }
  0x33   : > { %597 = sbr.rel (%p1958_p0) target bundleno = 58 (0x3a), region = 72 }
  0x38   : > { %v598_v0 = vld [vmem:[%s553_s20] sm:$0xff]  ;;  %vm599_vm0 = vcmask 261120  }
  0x39   : > { %600 = vst.msk [vmem:[%s2590_s21] sm:$0xff] %vm599_vm0, %v598_v0 }
  0x3a PF: > { %vm618_vm1 = vcmask 64512   ;;  %s2386_s1 = smov 120   ;;  %v2387_v2 = vmov 0.0   ;;  %s2388_s2 = smov 104   ;;  %vm2389_vm2 = vmmov 0   ;;  %vm846_vm3 = vcmask 1043456  }
  0x3b   : > { %2038 = vmatprep.subr.bf16.mxu0 %v2387_v2  ;;  %2040 = vmatprep.mubr.msk.bf16.mxu0 %vm2389_vm2, %v2387_v2  ;;  %s2390_s20 = smov 112   ;;  %s2391_s29 = smov 8   ;;  %vm1029_vm4 = vcmask 130112   ;;  %vm1035_vm5 = vcmask 195712   ;;  %vm1041_vm6 = vcmask 261312   ;;  %vm1047_vm7 = vcmask 261120  }
  0x3c   : > { %2044 = vmatprep.subr.bf16.mxu1 %v2387_v2  ;;  %2046 = vmatprep.mubr.msk.bf16.mxu1 %vm2389_vm2, %v2387_v2  ;;  %s2392_s19 = smov 16   ;;  %s2393_s28 = smov 24   ;;  %vm1302_vm8 = vcmask 130048   ;;  %vm1678_vm9 = vcmask 523264  }
  0x3d   : > { %s2916_s16 = scalar_lea.vmem %s2869_s6, %s2536_s13  ;;  %s2923_s17 = sld [smem:[#allocation23_spill]] }
  0x40   : > { %v2595_v1 = vld [vmem:[%s2590_s21] sm:$0xff] }
  0x41   : > { %605 = vrot.lane.b32.xlu0 %v2595_v1, %s2386_s1  ;;  %v2602_v3 = vpack.c.bf16 %v2595_v1, %v2595_v1  ;;  %611 = vrot.lane.b32.xlu1 %v2595_v1, %s2388_s2 }
  0x43   : > { %v620_v4 = vsel %vm618_vm1, %v2602_v3, 0  ;;  %v847_v44 = vsel %vm846_vm3, %v2602_v3, 0 }
  0x44   : > { %2039 = vmatpush3.bf16.xpose.msra.mxu0 %v620_v4 }
  0x45   : > { %608 = vrot.lane.b32.xlu0 %v2595_v1, %s2390_s20  ;;  %2050 = vmatprep.subr.bf16.mxu0 %v2387_v2 }
  0x4b   : > { %2041 = vmatmul.mubr.msk.bf16.vlgmr.msra.gmra.mxu0 %vm618_vm1, %v2602_v3 }
  0x4c   : > { %2052 = vmatprep.mubr.msk.bf16.mxu0 %vm2389_vm2, %v2387_v2 }
  0xb3   : > { %v606_v5 = vpop.permute.xlu0 %605  ;;  %v612_v7 = vpop.permute.xlu1 %611 }
  0xb4   : > { %v615_v6 = vpack.c.bf16 %v606_v5, %v606_v5  ;;  %v2623_v11 = vpack.c.bf16 %v612_v7, %v612_v7 }
  0xb6   : > { %v663_v8 = vsel %vm618_vm1, %v615_v6, 0  ;;  %v749_v13 = vsel %vm618_vm1, %v2623_v11, 0  ;;  %v892_v14 = vsel %vm846_vm3, %v615_v6, 0 }
  0xb7   : > { %2045 = vmatpush3.bf16.xpose.msra.mxu1 %v663_v8  ;;  %v609_v9 = vpop.permute.xlu0 %608 }
  0xb8   : > { %v2621_v10 = vpack.c.bf16 %v609_v9, %v609_v9  ;;  %2056 = vmatprep.subr.bf16.mxu1 %v2387_v2 }
  0xba   : > { %v706_v12 = vsel %vm618_vm1, %v2621_v10, 0  ;;  %v937_v0 = vsel %vm846_vm3, %v2621_v10, 0 }
  0xbb   : > { %2051 = vmatpush3.bf16.xpose.msra.mxu0 %v706_v12 }
  0xbc   : > { %2062 = vmatprep.subr.bf16.mxu0 %v2387_v2 }
  0xbe   : > { %2047 = vmatmul.mubr.msk.bf16.vlgmr.msra.gmra.mxu1 %vm618_vm1, %v615_v6 }
  0xbf   : > { %2057 = vmatpush3.bf16.xpose.msra.mxu1 %v749_v13  ;;  %2058 = vmatprep.mubr.msk.bf16.mxu1 %vm2389_vm2, %v2387_v2 }
  0xc0   : > { %2068 = vmatprep.subr.bf16.mxu1 %v2387_v2 }
  0xc2   : > { %2053 = vmatmul.mubr.msk.bf16.vlgmr.msra.gmra.mxu0 %vm618_vm1, %v2621_v10  ;;  %v982_v10 = vsel %vm846_vm3, %v2623_v11, 0 }
  0xc3   : > { %2064 = vmatprep.mubr.msk.bf16.mxu0 %vm2389_vm2, %v2387_v2  ;;  %2063 = vmatpush3.bf16.msra.mxu0 %v847_v44  ;;  %v603_v44 = vld [vmem:[%s2544_s23 + $0x8] sm:$0xff] }
  0xc4   : > { %2074 = vmatprep.subr.bf16.mxu0 %v2387_v2 }
  0xc6   : > { %2059 = vmatmul.mubr.msk.bf16.vlgmr.msra.gmra.mxu1 %vm618_vm1, %v2623_v11 }
  0xc7   : > { %2069 = vmatpush3.bf16.msra.mxu1 %v892_v14  ;;  %2070 = vmatprep.mubr.msk.bf16.mxu1 %vm2389_vm2, %v2387_v2 }
  0xc8   : > { %2080 = vmatprep.subr.bf16.mxu1 %v2387_v2 }
 0x10b   : > { %v656_v15 = vpop.f32.mrf.mxu0 }
 0x10c   : > { %v791_v16 = vmul.f32 0.35355338, %v656_v15 }
 0x10d   : > { %v2042_v17 = vpop.f32.mrf.mxu0 }
 0x10e   : > { %v795_v18 = vsel %vm618_vm1, %v791_v16, -inf }
 0x10f   : > { %796 = vmax.xlane.f32.xlu1 %v795_v18  ;;  %v659_v19 = vpop.f32.mrf.mxu0 }
 0x111   : > { %v2043_v20 = vpop.f32.mrf.mxu0 }
 0x17e   : > { %v699_v21 = vpop.f32.mrf.mxu1 }
 0x17f   : > { %v792_v22 = vmul.f32 0.35355338, %v699_v21 }
 0x180   : > { %v2048_v23 = vpop.f32.mrf.mxu1 }
 0x181   : > { %v798_v24 = vsel %vm618_vm1, %v792_v22, -inf }
 0x182   : > { %799 = vmax.xlane.f32.xlu0 %v798_v24  ;;  %v702_v25 = vpop.f32.mrf.mxu1  ;;  %v742_v26 = vpop.f32.mrf.mxu0 }
 0x183   : > { %v793_v27 = vmul.f32 0.35355338, %v742_v26 }
 0x184   : > { %v2049_v28 = vpop.f32.mrf.mxu1  ;;  %v2054_v29 = vpop.f32.mrf.mxu0 }
 0x185   : > { %v801_v30 = vsel %vm618_vm1, %v793_v27, -inf }
 0x186   : > { %v785_v31 = vpop.f32.mrf.mxu1  ;;  %802 = vmax.xlane.f32.xlu0 %v801_v30  ;;  %v745_v32 = vpop.f32.mrf.mxu0 }
 0x187   : > { %v794_v33 = vmul.f32 0.35355338, %v785_v31 }
 0x188   : > { %v2055_v34 = vpop.f32.mrf.mxu0  ;;  %v2060_v35 = vpop.f32.mrf.mxu1 }
 0x189   : > { %v804_v36 = vsel %vm618_vm1, %v794_v33, -inf }
 0x18a   : > { %v788_v37 = vpop.f32.mrf.mxu1  ;;  %805 = vmax.xlane.f32.xlu1 %v804_v36 }
 0x18c   : > { %v2061_v38 = vpop.f32.mrf.mxu1 }
 0x198   : > { %v797_v39 = vpop.xlane.xlu1 %796 }
 0x199   : > { %v807_v40 = vsub.f32 %v791_v16, %v797_v39 }
 0x19b   : > { %v811_v41 = vmul.f32 1.442695, %v807_v40 }
 0x19d   : > { %2254 = vpow2.f32 %v811_v41 }
 0x1aa   : > { %v2255_v42 = vpop.eup %2254 }
 0x1ab   : > { %v819_v43 = vsel %vm618_vm1, %v2255_v42, 0.0 }
 0x1ac   : > { %820 = vadd.xlane.f32.xlu0 %v819_v43  ;;  %v602_v43 = vld [vmem:[%s2544_s23] sm:$0xff] }
 0x20b   : > { %v800_v45 = vpop.xlane.xlu0 %799 }
 0x20c   : > { %v808_v46 = vsub.f32 %v792_v22, %v800_v45  ;;  %v2233_v45 = vpack.i.bf16 %v603_v44, %v602_v43 }
 0x20e   : > { %v813_v47 = vmul.f32 1.442695, %v808_v46  ;;  %v1110_v46 = vpack.c.bf16 %v603_v44, %v602_v43 }
 0x20f   : > { %v803_v48 = vpop.xlane.xlu0 %802 }
 0x210   : > { %2256 = vpow2.f32 %v813_v47  ;;  %v809_v49 = vsub.f32 %v793_v27, %v803_v48 }
 0x212   : > { %v815_v50 = vmul.f32 1.442695, %v809_v49 }
 0x213   : > { %v806_v51 = vpop.xlane.xlu1 %805 }
 0x214   : > { %2258 = vpow2.f32 %v815_v50  ;;  %v810_v52 = vsub.f32 %v794_v33, %v806_v51 }
 0x216   : > { %v817_v53 = vmul.f32 1.442695, %v810_v52 }
 0x218   : > { %2260 = vpow2.f32 %v817_v53 }
 0x21d   : > { %v2257_v54 = vpop.eup %2256 }
 0x21e   : > { %v822_v55 = vsel %vm618_vm1, %v2257_v54, 0.0 }
 0x21f   : > { %823 = vadd.xlane.f32.xlu1 %v822_v55 }
 0x221   : > { %v2259_v56 = vpop.eup %2258 }
 0x222   : > { %v825_v57 = vsel %vm618_vm1, %v2259_v56, 0.0 }
 0x223   : > { %826 = vadd.xlane.f32.xlu0 %v825_v57 }
 0x225   : > { %v2261_v58 = vpop.eup %2260 }
 0x226   : > { %v828_v59 = vsel %vm618_vm1, %v2261_v58, 0.0 }
 0x227   : > { %829 = vadd.xlane.f32.xlu1 %v828_v59  ;;  %v1967_v59 = vld [vmem:[%s2916_s16] ss:$0 sm:$0xff] }
 0x235   : > { %v821_v60 = vpop.xlane.xlu0 %820 }
 0x236   : > { %2262 = vrcp.f32 %v821_v60 }
 0x243   : > { %v2263_v61 = vpop.eup %2262 }
 0x244   : > { %v835_v62 = vmul.f32 %v2263_v61, %v2255_v42  ;;  %v1968_v61 = vld [vmem:[%s580_s22] ss:$0 sm:$0xff] }
 0x246   : > { %v839_v63 = vpack.c.bf16 %v835_v62, %v835_v62 }
 0x248   : > { %2065 = vmatmul.mubr.msk.bf16.vlgmr.msra.gmra.mxu0 %vm618_vm1, %v839_v63 }
 0x249   : > { %2075 = vmatpush3.bf16.msra.mxu0 %v937_v0  ;;  %2076 = vmatprep.mubr.msk.bf16.mxu0 %vm2389_vm2, %v2387_v2 }
 0x24a   : > { %2086 = vmatprep.subr.bf16.mxu0 %v2387_v2 }
 0x2a8   : > { %v824_v3 = vpop.xlane.xlu1 %823 }
 0x2a9   : > { %2264 = vrcp.f32 %v824_v3 }
 0x2ac   : > { %v827_v4 = vpop.xlane.xlu0 %826 }
 0x2ad   : > { %2266 = vrcp.f32 %v827_v4 }
 0x2b0   : > { %v830_v5 = vpop.xlane.xlu1 %829 }
 0x2b1   : > { %2268 = vrcp.f32 %v830_v5 }
 0x2b6   : > { %v2265_v6 = vpop.eup %2264 }
 0x2b7   : > { %v836_v7 = vmul.f32 %v2265_v6, %v2257_v54 }
 0x2b9   : > { %v840_v8 = vpack.c.bf16 %v836_v7, %v836_v7 }
 0x2ba   : > { %v2267_v9 = vpop.eup %2266 }
 0x2bb   : > { %2071 = vmatmul.mubr.msk.bf16.vlgmr.msra.gmra.mxu1 %vm618_vm1, %v840_v8  ;;  %v837_v12 = vmul.f32 %v2267_v9, %v2259_v56 }
 0x2bc   : > { %2081 = vmatpush3.bf16.msra.mxu1 %v982_v10  ;;  %2082 = vmatprep.mubr.msk.bf16.mxu1 %vm2389_vm2, %v2387_v2 }
 0x2bd   : > { %v841_v13 = vpack.c.bf16 %v837_v12, %v837_v12  ;;  %2092 = vmatprep.subr.bf16.mxu1 %v2387_v2 }
 0x2be   : > { %v2269_v14 = vpop.eup %2268 }
 0x2bf   : > { %2077 = vmatmul.mubr.msk.bf16.vlgmr.msra.gmra.mxu0 %vm618_vm1, %v841_v13  ;;  %v838_v15 = vmul.f32 %v2269_v14, %v2261_v58 }
 0x2c0   : > { %2088 = vmatprep.mubr.msk.bf16.mxu0 %vm2389_vm2, %v2387_v2 }
 0x2c1   : > { %v842_v16 = vpack.c.bf16 %v838_v15, %v838_v15 }
 0x2c3   : > { %2083 = vmatmul.mubr.msk.bf16.vlgmr.msra.gmra.mxu1 %vm618_vm1, %v842_v16 }
 0x2c4   : > { %2094 = vmatprep.mubr.msk.bf16.mxu1 %vm2389_vm2, %v2387_v2 }
 0x308   : > { %v883_v11 = vpop.f32.mrf.mxu0 }
 0x309   : > { %1024 = vst.msk [vmem:[#allocation2] sm:$0xff] %vm618_vm1, %v883_v11 }
 0x30a   : > { %v2066_v17 = vpop.f32.mrf.mxu0 }
 0x30c   : > { %v886_v18 = vpop.f32.mrf.mxu0 }
 0x30e   : > { %v2067_v19 = vpop.f32.mrf.mxu0 }
 0x37b   : > { %v928_v20 = vpop.f32.mrf.mxu1 }
 0x37c   : > { %1026 = vrot.lane.b32.xlu0 %v928_v20, %s2391_s29 }
 0x37d   : > { %v2072_v21 = vpop.f32.mrf.mxu1 }
 0x37f   : > { %v931_v22 = vpop.f32.mrf.mxu1  ;;  %v973_v23 = vpop.f32.mrf.mxu0 }
 0x380   : > { %1032 = vrot.lane.b32.xlu1 %v973_v23, %s2392_s19 }
 0x381   : > { %v2073_v24 = vpop.f32.mrf.mxu1  ;;  %v2078_v25 = vpop.f32.mrf.mxu0 }
 0x383   : > { %v976_v26 = vpop.f32.mrf.mxu0  ;;  %v1018_v27 = vpop.f32.mrf.mxu1 }
 0x384   : > { %1038 = vrot.lane.b32.xlu1 %v1018_v27, %s2393_s28 }
 0x385   : > { %v2079_v28 = vpop.f32.mrf.mxu0  ;;  %v2084_v29 = vpop.f32.mrf.mxu1 }
 0x387   : > { %v1021_v30 = vpop.f32.mrf.mxu1 }
 0x389   : > { %v2085_v31 = vpop.f32.mrf.mxu1 }
 0x3ee   : > { %v1027_v32 = vpop.permute.xlu0 %1026 }
 0x3ef   : > { %1030 = vst.msk [vmem:[#allocation2] sm:$0xff] %vm1029_vm4, %v1027_v32 }
 0x3f2   : > { %v1033_v33 = vpop.permute.xlu1 %1032 }
 0x3f3   : > { %1036 = vst.msk [vmem:[#allocation2] sm:$0xff] %vm1035_vm5, %v1033_v33 }
 0x3f6   : > { %v1039_v34 = vpop.permute.xlu1 %1038 }
 0x3f7   : > { %1042 = vst.msk [vmem:[#allocation2] sm:$0xff] %vm1041_vm6, %v1039_v34 }
 0x3fe   : > { %v1043_v35 = vld [vmem:[#allocation2] sm:$0xff] }
 0x3ff   : > { %v1044_v36 = vadd.f32 %v1043_v35, %v2595_v1  ;;  %v1118_v1 = vsel %vm618_vm1, %v1110_v46, 0 }
 0x400   : > { %2087 = vmatpush3.bf16.xpose.msra.mxu0 %v1118_v1 }
 0x401   : > { %v1048_v37 = vsel %vm1047_vm7, %v1044_v36, 0.0  ;;  %2098 = vmatprep.subr.bf16.mxu0 %v2387_v2 }
 0x402   : > { %1049 = vadd.xlane.f32.xlu0 %v1048_v37 }
 0x418   : > { %2234 = vrot.lane.b32.xlu0 %v2233_v45, %s2386_s1 }
 0x48b   : > { %v1050_v38 = vpop.xlane.xlu0 %1049 }
 0x48c   : > { %v1052_v39 = vmul.f32 0.03125, %v1050_v38 }
 0x48e   : > { %v1053_v40 = vsub.f32 %v1044_v36, %v1052_v39 }
 0x48f   : > { %v2235_v49 = vpop.permute.xlu0 %2234 }
 0x490   : > { %v1054_v41 = vmul.f32 %v1053_v40, %v1053_v40  ;;  %v2237_v50 = vunpack.i.h.bf16 %v2235_v49  ;;  %v2236_v51 = vunpack.i.l.bf16 %v2235_v49 }
 0x492   : > { %v1055_v42 = vsel %vm1047_vm7, %v1054_v41, 0.0  ;;  %v1111_v53 = vpack.c.bf16 %v2237_v50, %v2236_v51 }
 0x493   : > { %1056 = vadd.xlane.f32.xlu1 %v1055_v42 }
 0x494   : > { %v1164_v54 = vsel %vm618_vm1, %v1111_v53, 0 }
 0x495   : > { %2093 = vmatpush3.bf16.xpose.msra.mxu1 %v1164_v54 }
 0x496   : > { %2104 = vmatprep.subr.bf16.mxu1 %v2387_v2 }
 0x4a4   : > { %2239 = vrot.lane.b32.xlu1 %v2233_v45, %s2390_s20 }
 0x4a8   : > { %2244 = vrot.lane.b32.xlu1 %v2233_v45, %s2388_s2 }
 0x51c   : > { %v1057_v47 = vpop.xlane.xlu1 %1056 }
 0x51d   : > { %v1058_v48 = vmul.f32 0.03125, %v1057_v47 }
 0x51f   : > { %v1059_v52 = vadd.f32 1e-05, %v1058_v48 }
 0x520   : > { %v2240_v55 = vpop.permute.xlu1 %2239 }
 0x521   : > { %2270 = vrsqrt.f32 %v1059_v52  ;;  %v2242_v56 = vunpack.i.h.bf16 %v2240_v55  ;;  %v2241_v57 = vunpack.i.l.bf16 %v2240_v55 }
 0x523   : > { %v2703_v63 = vpack.c.bf16 %v2242_v56, %v2241_v57 }
 0x524   : > { %v2245_v5 = vpop.permute.xlu1 %2244 }
 0x525   : > { %v1210_v4 = vsel %vm618_vm1, %v2703_v63, 0  ;;  %v2247_v6 = vunpack.i.h.bf16 %v2245_v5  ;;  %v2246_v7 = vunpack.i.l.bf16 %v2245_v5 }
 0x527   : > { %v2721_v8 = vpack.c.bf16 %v2247_v6, %v2246_v7 }
 0x529   : > { %v1256_v12 = vsel %vm618_vm1, %v2721_v8, 0 }
 0x52e   : > { %v2271_v58 = vpop.eup %2270 }
 0x52f   : > { %v1061_v60 = vmul.f32 %v2271_v58, %v1053_v40 }
 0x531   : > { %v1068_v62 = vmul.f32 %v1967_v59, %v1061_v60 }
 0x533   : > { %v2705_v0 = vadd.f32 %v1968_v61, %v1068_v62 }
 0x535   : > { %1083 = vrot.lane.b32.xlu1 %v2705_v0, %s2388_s2  ;;  %1077 = vrot.lane.b32.xlu0 %v2705_v0, %s2386_s1  ;;  %v1086_v3 = vpack.c.bf16 %v2705_v0, %v2705_v0  ;;  %s2917_s1 = scalar_lea.vmem %s2866_s3, %s2536_s13 }
 0x537   : > { %2089 = vmatmul.mubr.msk.bf16.vlgmr.msra.gmra.mxu0 %vm618_vm1, %v1086_v3 }
 0x538   : > { %2099 = vmatpush3.bf16.xpose.msra.mxu0 %v1210_v4  ;;  %2100 = vmatprep.mubr.msk.bf16.mxu0 %vm2389_vm2, %v2387_v2 }
 0x539   : > { %1080 = vrot.lane.b32.xlu0 %v2705_v0, %s2390_s20  ;;  %2110 = vmatprep.subr.bf16.mxu0 %v2387_v2  ;;  %s2918_s20 = scalar_lea.vmem %s2868_s5, %s2536_s13  ;;  %s2394_s13 = smov [#allocation3]  }
 0x5a7   : > { %v1078_v9 = vpop.permute.xlu0 %1077  ;;  %v1084_v15 = vpop.permute.xlu1 %1083 }
 0x5a8   : > { %v1087_v10 = vpack.c.bf16 %v1078_v9, %v1078_v9  ;;  %v1089_v16 = vpack.c.bf16 %v1084_v15, %v1084_v15 }
 0x5aa   : > { %2095 = vmatmul.mubr.msk.bf16.vlgmr.msra.gmra.mxu1 %vm618_vm1, %v1087_v10 }
 0x5ab   : > { %2105 = vmatpush3.bf16.xpose.msra.mxu1 %v1256_v12  ;;  %v1081_v13 = vpop.permute.xlu0 %1080  ;;  %2106 = vmatprep.mubr.msk.bf16.mxu1 %vm2389_vm2, %v2387_v2 }
 0x5ac   : > { %v1088_v14 = vpack.c.bf16 %v1081_v13, %v1081_v13  ;;  %2116 = vmatprep.subr.bf16.mxu1 %v2387_v2 }
 0x5ae   : > { %2101 = vmatmul.mubr.msk.bf16.vlgmr.msra.gmra.mxu0 %vm618_vm1, %v1088_v14 }
 0x5af   : > { %2111 = vmatpush3.bf16.msra.mxu0 %v1110_v46  ;;  %2112 = vmatprep.mubr.msk.bf16.mxu0 %vm2389_vm2, %v2387_v2 }
 0x5b0   : > { %2122 = vmatprep.subr.bf16.mxu0 %v2387_v2 }
 0x5b2   : > { %2107 = vmatmul.mubr.msk.bf16.vlgmr.msra.gmra.mxu1 %vm618_vm1, %v1089_v16 }
 0x5b3   : > { %2117 = vmatpush3.bf16.msra.mxu1 %v1111_v53  ;;  %2118 = vmatprep.mubr.msk.bf16.mxu1 %vm2389_vm2, %v2387_v2 }
 0x5b4   : > { %2128 = vmatprep.subr.bf16.mxu1 %v2387_v2 }
 0x5f7   : > { %v1154_v11 = vpop.f32.mrf.mxu0 }
 0x5f8   : > { %v1298_v17 = vmul.f32 0.35355338, %v1154_v11 }
 0x5f9   : > { %v2090_v18 = vpop.f32.mrf.mxu0 }
 0x5fa   : > { %v1303_v19 = vsel %vm1302_vm8, %v1298_v17, -inf }
 0x5fb   : > { %1304 = vmax.xlane.f32.xlu0 %v1303_v19  ;;  %v1157_v20 = vpop.f32.mrf.mxu0 }
 0x5fd   : > { %v2091_v21 = vpop.f32.mrf.mxu0 }
 0x66a   : > { %v1200_v22 = vpop.f32.mrf.mxu1 }
 0x66b   : > { %v1299_v23 = vmul.f32 0.35355338, %v1200_v22 }
 0x66c   : > { %v2096_v24 = vpop.f32.mrf.mxu1 }
 0x66d   : > { %v1306_v25 = vsel %vm1302_vm8, %v1299_v23, -inf }
 0x66e   : > { %1307 = vmax.xlane.f32.xlu1 %v1306_v25  ;;  %v1203_v26 = vpop.f32.mrf.mxu1  ;;  %v1246_v27 = vpop.f32.mrf.mxu0 }
 0x66f   : > { %v1300_v28 = vmul.f32 0.35355338, %v1246_v27 }
 0x670   : > { %v2097_v29 = vpop.f32.mrf.mxu1  ;;  %v2102_v30 = vpop.f32.mrf.mxu0 }
 0x671   : > { %v1309_v31 = vsel %vm1302_vm8, %v1300_v28, -inf }
 0x672   : > { %v1292_v32 = vpop.f32.mrf.mxu1  ;;  %1310 = vmax.xlane.f32.xlu0 %v1309_v31  ;;  %v1249_v33 = vpop.f32.mrf.mxu0 }
 0x673   : > { %v1301_v34 = vmul.f32 0.35355338, %v1292_v32 }
 0x674   : > { %v2103_v35 = vpop.f32.mrf.mxu0  ;;  %v2108_v36 = vpop.f32.mrf.mxu1 }
 0x675   : > { %v1312_v37 = vsel %vm1302_vm8, %v1301_v34, -inf }
 0x676   : > { %v1295_v38 = vpop.f32.mrf.mxu1  ;;  %1313 = vmax.xlane.f32.xlu0 %v1312_v37 }
 0x678   : > { %v2109_v39 = vpop.f32.mrf.mxu1 }
 0x684   : > { %v1305_v40 = vpop.xlane.xlu0 %1304 }
 0x685   : > { %v1315_v41 = vsub.f32 %v1298_v17, %v1305_v40 }
 0x687   : > { %v1319_v42 = vmul.f32 1.442695, %v1315_v41  ;;  %v2248_v41 = vld [vmem:[%s2554_s25 + $0x8] sm:$0xff]  }
 0x689   : > { %2272 = vpow2.f32 %v1319_v42  ;;  %v2249_v42 = vld [vmem:[%s2554_s25] sm:$0xff]   ;;  %s1767_s25 = sshll.u32 %s2590_s21, 4  ;;  %s1768_s25 = int_to_ptr.vmem [resolvable:$true] %s1767_s25 }
 0x696   : > { %v2273_v43 = vpop.eup %2272 }
 0x697   : > { %v1327_v44 = vsel %vm1302_vm8, %v2273_v43, 0.0 }
 0x698   : > { %1328 = vadd.xlane.f32.xlu1 %v1327_v44 }
 0x6f7   : > { %v1308_v45 = vpop.xlane.xlu1 %1307 }
 0x6f8   : > { %v1316_v46 = vsub.f32 %v1299_v23, %v1308_v45 }
 0x6fa   : > { %v1321_v1 = vmul.f32 1.442695, %v1316_v46 }
 0x6fb   : > { %v1311_v47 = vpop.xlane.xlu0 %1310 }
 0x6fc   : > { %2274 = vpow2.f32 %v1321_v1  ;;  %v1317_v48 = vsub.f32 %v1300_v28, %v1311_v47  ;;  %v1977_v47 = vld [vmem:[%s583_s0] ss:$0 sm:$0xff] }
 0x6fe   : > { %v1323_v49 = vmul.f32 1.442695, %v1317_v48 }
 0x6ff   : > { %v1314_v50 = vpop.xlane.xlu0 %1313 }
 0x700   : > { %2276 = vpow2.f32 %v1323_v49  ;;  %v1318_v51 = vsub.f32 %v1301_v34, %v1314_v50  ;;  %v1978_v49 = vld [vmem:[%s586_s24] ss:$0 sm:$0xff] }
 0x702   : > { %v1325_v52 = vmul.f32 1.442695, %v1318_v51 }
 0x704   : > { %2278 = vpow2.f32 %v1325_v52 }
 0x709   : > { %v2275_v53 = vpop.eup %2274 }
 0x70a   : > { %v1330_v54 = vsel %vm1302_vm8, %v2275_v53, 0.0 }
 0x70b   : > { %1331 = vadd.xlane.f32.xlu0 %v1330_v54  ;;  %v2253_v54 = vld [vmem:[%s2560_s27] sm:$0xff]  }
 0x70d   : > { %v2277_v55 = vpop.eup %2276 }
 0x70e   : > { %v1333_v56 = vsel %vm1302_vm8, %v2277_v55, 0.0 }
 0x70f   : > { %1334 = vadd.xlane.f32.xlu1 %v1333_v56 }
 0x711   : > { %v2279_v57 = vpop.eup %2278 }
 0x712   : > { %v1336_v58 = vsel %vm1302_vm8, %v2279_v57, 0.0 }
 0x713   : > { %1337 = vadd.xlane.f32.xlu0 %v1336_v58 }
 0x721   : > { %v1329_v59 = vpop.xlane.xlu1 %1328 }
 0x722   : > { %2280 = vrcp.f32 %v1329_v59 }
 0x72f   : > { %v2281_v60 = vpop.eup %2280 }
 0x730   : > { %v1343_v61 = vmul.f32 %v2281_v60, %v2273_v43  ;;  %v2251_v43 = vld [vmem:[%s2560_s27 + $0x10] sm:$0xff]  }
 0x732   : > { %v1347_v62 = vpack.c.bf16 %v1343_v61, %v1343_v61 }
 0x734   : > { %2113 = vmatmul.mubr.msk.bf16.vlgmr.msra.gmra.mxu0 %vm1302_vm8, %v1347_v62 }
 0x735   : > { %2123 = vmatpush3.bf16.msra.mxu0 %v2703_v63  ;;  %2124 = vmatprep.mubr.msk.bf16.mxu0 %vm2389_vm2, %v2387_v2 }
 0x736   : > { %2134 = vmatprep.subr.bf16.mxu0 %v2387_v2 }
 0x794   : > { %v1332_v3 = vpop.xlane.xlu0 %1331 }
 0x795   : > { %2282 = vrcp.f32 %v1332_v3 }
 0x798   : > { %v1335_v4 = vpop.xlane.xlu1 %1334 }
 0x799   : > { %2284 = vrcp.f32 %v1335_v4 }
 0x79c   : > { %v1338_v5 = vpop.xlane.xlu0 %1337 }
 0x79d   : > { %2286 = vrcp.f32 %v1338_v5 }
 0x7a2   : > { %v2283_v6 = vpop.eup %2282 }
 0x7a3   : > { %v1344_v7 = vmul.f32 %v2283_v6, %v2275_v53  ;;  %v2252_v53 = vld [vmem:[%s2560_s27 + $0x8] sm:$0xff]  }
 0x7a5   : > { %v1348_v9 = vpack.c.bf16 %v1344_v7, %v1344_v7 }
 0x7a6   : > { %v2285_v10 = vpop.eup %2284 }
 0x7a7   : > { %2119 = vmatmul.mubr.msk.bf16.vlgmr.msra.gmra.mxu1 %vm1302_vm8, %v1348_v9  ;;  %v1345_v12 = vmul.f32 %v2285_v10, %v2277_v55  ;;  %v1979_v55 = vld [vmem:[%s2917_s1] ss:$0 sm:$0xff] }
 0x7a8   : > { %2129 = vmatpush3.bf16.msra.mxu1 %v2721_v8  ;;  %2130 = vmatprep.mubr.msk.bf16.mxu1 %vm2389_vm2, %v2387_v2 }
 0x7a9   : > { %v1349_v63 = vpack.c.bf16 %v1345_v12, %v1345_v12  ;;  %2142 = vmatprep.subr.bf16.mxu1 %v2387_v2 }
 0x7aa   : > { %v2287_v13 = vpop.eup %2286 }
 0x7ab   : > { %2125 = vmatmul.mubr.msk.bf16.vlgmr.msra.gmra.mxu0 %vm1302_vm8, %v1349_v63  ;;  %v1346_v14 = vmul.f32 %v2287_v13, %v2279_v57 }
 0x7ac   : > { %2138 = vmatprep.mubr.msk.bf16.mxu0 %vm2389_vm2, %v2387_v2  ;;  %2135 = vmatpush3.bf16.msra.mxu0 %v2248_v41 }
 0x7ad   : > { %v1350_v15 = vpack.c.bf16 %v1346_v14, %v1346_v14  ;;  %2136 = vmatprep.subr.bf16.mxu0 %v2387_v2 }
 0x7af   : > { %2131 = vmatmul.mubr.msk.bf16.vlgmr.msra.gmra.mxu1 %vm1302_vm8, %v1350_v15 }
 0x7b0   : > { %2150 = vmatprep.mubr.msk.bf16.mxu1 %vm2389_vm2, %v2387_v2  ;;  %2137 = vmatpush3.bf16.msra.mxu0 %v2249_v42 }
 0x7f4   : > { %v1388_v8 = vpop.f32.mrf.mxu0 }
 0x7f5   : > { %1523 = vst.msk [vmem:[#allocation2] sm:$0xff] %vm618_vm1, %v1388_v8 }
 0x7f6   : > { %v2114_v16 = vpop.f32.mrf.mxu0 }
 0x7f8   : > { %v1391_v11 = vpop.f32.mrf.mxu0 }
 0x7fa   : > { %v2115_v17 = vpop.f32.mrf.mxu0 }
 0x867   : > { %v1431_v18 = vpop.f32.mrf.mxu1 }
 0x868   : > { %1525 = vrot.lane.b32.xlu1 %v1431_v18, %s2391_s29  ;;  %s2920_s29 = sld [smem:[#allocation7_spill]]  ;;  %v1989_v18 = vld [vmem:[%s589_s14] ss:$0 sm:$0xff]  ;;  %s2292_s14 = scalar_lea.vmem %s1768_s25, 128 }
 0x869   : > { %v2120_v19 = vpop.f32.mrf.mxu1  ;;  %p2293_p1 = scmp.ne.s32.totalorder %s1768_s25, %s2292_s14 }
 0x86b   : > { %v1434_v20 = vpop.f32.mrf.mxu1  ;;  %v1474_v21 = vpop.f32.mrf.mxu0  ;;  %p2294_p2 = pnand %p2293_p1, %p2509_p3 }
 0x86c   : > { %1530 = vrot.lane.b32.xlu0 %v1474_v21, %s2392_s19  ;;  %v1990_v20 = vld [vmem:[%s592_s18] ss:$0 sm:$0xff]  ;;  %s2296_s18 = sshll.u32 %s2394_s13, 4  ;;  %s2297_s18 = int_to_ptr.vmem [resolvable:$false] %s2296_s18 }
 0x86d   : > { %v2121_v22 = vpop.f32.mrf.mxu1  ;;  %v2126_v23 = vpop.f32.mrf.mxu0  ;;  %p2295_p4 = pneg %p2294_p2  ;;  %s2298_s24 = scalar_lea.vmem %s2297_s18, 256 }
 0x86e   : > { %s2924_s0 = sand.u32 1, %s2920_s29   ;;  %p2299_p5 = scmp.lt.s32.totalorder %s1768_s25, %s2297_s18 }
 0x86f   : > { %v1477_v24 = vpop.f32.mrf.mxu0  ;;  %v1517_v25 = vpop.f32.mrf.mxu1  ;;  %s1754_s1 = scalar_lea.sflag [#allocation4], %s2924_s0  ;;  %p2300_p6 = scmp.lt.s32.totalorder %s2298_s24, %s2292_s14 }
 0x870   : > { %1535 = vrot.lane.b32.xlu1 %v1517_v25, %s2393_s28 }
 0x871   : > { %v2127_v26 = vpop.f32.mrf.mxu0  ;;  %v2132_v27 = vpop.f32.mrf.mxu1  ;;  %p2301_p7 = por %p2300_p6, %p2299_p5 }
 0x873   : > { %v1520_v28 = vpop.f32.mrf.mxu1  ;;  %p2302_p8 = pnand %p2301_p7, %p2295_p4 }
 0x875   : > { %v2133_v29 = vpop.f32.mrf.mxu1 }
 0x8da   : > { %v1526_v30 = vpop.permute.xlu1 %1525 }
 0x8db   : > { %1528 = vst.msk [vmem:[#allocation2] sm:$0xff] %vm1029_vm4, %v1526_v30 }
 0x8de   : > { %v1531_v31 = vpop.permute.xlu0 %1530 }
 0x8df   : > { %1533 = vst.msk [vmem:[#allocation2] sm:$0xff] %vm1035_vm5, %v1531_v31 }
 0x8e2   : > { %v1536_v32 = vpop.permute.xlu1 %1535 }
 0x8e3   : > { %1538 = vst.msk [vmem:[#allocation2] sm:$0xff] %vm1041_vm6, %v1536_v32 }
 0x8ea   : > { %v1539_v33 = vld [vmem:[#allocation2] sm:$0xff] }
 0x8eb   : > { %v1540_v34 = vadd.f32 %v1539_v33, %v2705_v0  ;;  %v2250_v0 = vld [vmem:[%s2560_s27 + $0x18] sm:$0xff]   ;;  %s2919_s27 = sld [smem:[#allocation10_spill]] }
 0x8ec   : > { %2143 = vmatpush3.bf16.msra.mxu1 %v2250_v0 }
 0x8ed   : > { %v1543_v35 = vsel %vm1047_vm7, %v1540_v34, 0.0  ;;  %2144 = vmatprep.subr.bf16.mxu1 %v2387_v2 }
 0x8ee   : > { %1544 = vadd.xlane.f32.xlu1 %v1543_v35 }
 0x8f0   : > { %2145 = vmatpush3.bf16.msra.mxu1 %v2251_v43 }
 0x8f1   : > { %2146 = vmatprep.subr.bf16.mxu1 %v2387_v2  ;;  %s1992_s30 = sshll.u32 %s2919_s27, 7 }
 0x8f2   : > { %s1765_s12 = scalar_lea.hbm %s2923_s17, %s1992_s30 }
 0x8f4   : > { %2147 = vmatpush3.bf16.msra.mxu1 %v2252_v53 }
 0x8f5   : > { %2148 = vmatprep.subr.bf16.mxu1 %v2387_v2  ;;  %v1983_v2 = vld [vmem:[%s2918_s20] ss:$0 sm:$0xff] }
 0x8f8   : > { %2149 = vmatpush3.bf16.msra.mxu1 %v2253_v54 }
 0x977   : > { %v1545_v36 = vpop.xlane.xlu1 %1544 }
 0x978   : > { %v1546_v37 = vmul.f32 0.03125, %v1545_v36 }
 0x97a   : > { %v1547_v38 = vsub.f32 %v1540_v34, %v1546_v37 }
 0x97c   : > { %v1548_v39 = vmul.f32 %v1547_v38, %v1547_v38 }
 0x97e   : > { %v1549_v40 = vsel %vm1047_vm7, %v1548_v39, 0.0 }
 0x97f   : > { %1550 = vadd.xlane.f32.xlu0 %v1549_v40 }
 0xa08   : > { %v1551_v44 = vpop.xlane.xlu0 %1550 }
 0xa09   : > { %v1552_v45 = vmul.f32 0.03125, %v1551_v44 }
 0xa0b   : > { %v1553_v46 = vadd.f32 1e-05, %v1552_v45 }
 0xa0d   : > { %2288 = vrsqrt.f32 %v1553_v46 }
 0xa1a   : > { %v2289_v1 = vpop.eup %2288 }
 0xa1b   : > { %v1555_v48 = vmul.f32 %v2289_v1, %v1547_v38 }
 0xa1d   : > { %v1562_v50 = vmul.f32 %v1977_v47, %v1555_v48 }
 0xa1f   : > { %v1569_v51 = vadd.f32 %v1978_v49, %v1562_v50 }
 0xa21   : > { %v1570_v52 = vpack.c.bf16 %v1569_v51, %v1569_v51 }
 0xa23   : > { %2139 = vmatmul.mubr.msk.bf16.vlgmr.msra.gmra.mxu0 %vm1047_vm7, %v1570_v52 }
 0xae3   : > { %v1631_v56 = vpop.f32.mrf.mxu0 }
 0xae4   : > { %v1632_v57 = vadd.f32 %v1979_v55, %v1631_v56 }
 0xae5   : > { %v2140_v58 = vpop.f32.mrf.mxu0 }
 0xae6   : > { %v1637_v59 = vmax.f32 %v1632_v57, 0.0 }
 0xae7   : > { %v1634_v60 = vpop.f32.mrf.mxu0 }
 0xae8   : > { %v1638_v61 = vpack.c.bf16 %v1637_v59, %v1637_v59 }
 0xae9   : > { %v2141_v62 = vpop.f32.mrf.mxu0 }
 0xaea   : > { %2151 = vmatmul.mubr.msk.bf16.vlgmr.msra.gmra.mxu1 %vm1678_vm9, %v1638_v61 }
 0xbaa   : > { %v1716_v3 = vpop.f32.mrf.mxu1 }
 0xbab   : > { %v1717_v4 = vadd.f32 %v1983_v2, %v1716_v3 }
 0xbac   : > { %v2152_v5 = vpop.f32.mrf.mxu1 }
 0xbad   : > { %v1722_v6 = vadd.f32 %v1717_v4, %v1569_v51 }
 0xbae   : > { %v1719_v7 = vpop.f32.mrf.mxu1 }
 0xbaf   : > { %v1725_v9 = vsel %vm1047_vm7, %v1722_v6, 0.0 }
 0xbb0   : > { %1726 = vadd.xlane.f32.xlu0 %v1725_v9  ;;  %v2153_v10 = vpop.f32.mrf.mxu1 }
 0xc39   : > { %v1727_v12 = vpop.xlane.xlu0 %1726 }
 0xc3a   : > { %v1728_v63 = vmul.f32 0.03125, %v1727_v12 }
 0xc3c   : > { %v1729_v13 = vsub.f32 %v1722_v6, %v1728_v63 }
 0xc3e   : > { %v1730_v14 = vmul.f32 %v1729_v13, %v1729_v13 }
 0xc40   : > { %v1731_v15 = vsel %vm1047_vm7, %v1730_v14, 0.0 }
 0xc41   : > { %1732 = vadd.xlane.f32.xlu1 %v1731_v15 }
 0xcca   : > { %v1733_v8 = vpop.xlane.xlu1 %1732 }
 0xccb   : > { %v1734_v16 = vmul.f32 0.03125, %v1733_v8 }
 0xccd   : > { %v1735_v11 = vadd.f32 1e-05, %v1734_v16 }
 0xccf   : > { %2290 = vrsqrt.f32 %v1735_v11 }
 0xcdc   : > { %v2291_v17 = vpop.eup %2290 }
 0xcdd   : > { %v1737_v19 = vmul.f32 %v2291_v17, %v1729_v13 }
 0xcdf   : > { %v1744_v21 = vmul.f32 %v1989_v18, %v1737_v19 }
 0xce1   : > { %v1751_v22 = vadd.f32 %v1990_v20, %v1744_v21 }
 0xce3   : > { %1752 = vst.msk [vmem:[%s2590_s21] sm:$0xff] %vm1047_vm7, %v1751_v22 }
 0xce4   : > { %2305 = shalt.err (!%p2302_p8)
}
 0xce5   : > { %s2306_s2 = scalar_lea.hbm %s1765_s12, 128  ;;  %s2310_s27 = scalar_lea.hbm %s2923_s17, 256 }
 0xce6   : > { %p2307_p10 = scmp.ne.s32.totalorder %s1765_s12, %s2306_s2  ;;  %p2311_p13 = scmp.lt.s32.totalorder %s1765_s12, %s2923_s17 }
 0xce7   : > { %p2312_p0 = scmp.lt.s32.totalorder %s2310_s27, %s2306_s2 }
 0xce8   : > { %p2308_p11 = pnand %p2307_p10, %p2509_p3 }
 0xce9   : > { %p2313_p1 = por %p2312_p0, %p2311_p13 }
 0xcea   : > { %p2309_p12 = pneg %p2308_p11 }
 0xcec   : > { %p2314_p2 = pnand %p2313_p1, %p2309_p12 }
 0xcee   : > { %2317 = shalt.err (!%p2314_p2)
}
 0xcef   : > { %2154 = dma.vmem_to_hbm [thread:$0]  (%p2509_p3), %s1768_s25, 128, %s1765_s12, %s1754_s1  }
 0xcf0 PF: > { %s2925_s23 = sld [smem:[#allocation13_spill]] }
 0xcf1   : > { %s2926_s15 = sld [smem:[#allocation6_spill]] }
 0xcf6   : > { %p2160_p4 = scmp.ge.s32.totalorder %s2925_s23, 2 }
 0xcf7   : > { %s1779_s11 = sand.u32 1, %s2926_s15  }
 0xcf8   : > { %p2157_p5 = pnand %p2160_p4, %p2519_p9  ;;  %s1780_s30 = scalar_lea.sflag [#allocation4], %s1779_s11 }
 0xcfa   : > { %p2158_p6 = pneg %p2157_p5 }
 0xcfc   : > { %2351 = dma.done.wait (%p2158_p6), %s1780_s30, 128  }
 0xcfd   : > { %2353 = vsyncadd (%p2158_p6), %s1780_s30, 4294967168  ;;  %s25_s28 = sadd.s32 1, %s2925_s23   ;;  %s2928_s21 = sld [smem:[#allocation7_spill]] }
 0xcfe   : > { %p22_p7 = scmp.ge.s32.totalorder %s25_s28, 6   ;;  %s2929_s22 = sld [smem:[#allocation8_spill]] }
 0xcff   : > { %s2930_s23 = sld [smem:[#allocation18_spill]] }
 0xd00   : > { %s2931_s24 = sld [smem:[#allocation11_spill]]  ;;  %24 = sbr.rel (!%p22_p7) target bundleno = 11 (0xb), region = 140 }
 0xd01   : > { %s2932_s25 = sld [smem:[#allocation12_spill]] }
 0xd02   : > { %s2933_s26 = sld [smem:[#allocation14_spill]] }
 0xd03   : > { %s2934_s27 = sld [smem:[#allocation16_spill]] }
 0xd05   :  { %1785 = vsyncpa [#allocation4], 1 }
 0xd06   :  { %1787 = vsyncpa [#allocation4 + $0x1], 1 }

</bundles_post_ra>
